<compile_context>
chip_gen: v7x
topology: tpu7x:2x2x1
jax: 0.10.0
libtpu: 0.0.40
codegen_flags: <defaults>
</compile_context>

<pallas_src>
import jax
import jax.numpy as jnp
from jax import lax
from jax.experimental import pallas as pl
from jax.experimental.pallas import tpu as pltpu


def _round_up(n, m):
    return ((n + m - 1) // m) * m


# ----------------------------------------------------------------------------
# Fused kernel: all RNN layers + FC head + BCEWithLogits loss + accuracy.
#
#   refs layout:
#     x_ref                                  (T, B_pad, D_pad)   time-major input
#     for each layer l:
#       w_ih_t_ref_l                         (Din_pad, H_pad)    pre-transposed W_ih
#       w_hh_t_ref_l                         (H_pad,   H_pad)    pre-transposed W_hh
#       bias_ref_l                           (1, H_pad)          b_ih + b_hh
#     fc_w_ref                               (T, H_pad)          fc weight, (t, h) layout
#     fc_b_ref                               (1, 1)
#     y_ref                                  (B_pad, 1)          labels {0,1}, padded rows 0
#     out_ref                                (B_pad, 128)        packed: col0=logits,
#                                                                col1=loss, col2=acc
# ----------------------------------------------------------------------------
def _make_fused_kernel(num_layers, seq_len, batch):
    inv_b = 1.0 / batch

    def kernel(*refs):
        x_ref = refs[0]
        layer_refs = refs[1:1 + 3 * num_layers]
        fc_w_ref, fc_b_ref, y_ref, out_ref = refs[1 + 3 * num_layers:]

        T, B_pad, _ = x_ref.shape
        H_pad = layer_refs[1].shape[1]

        fc_w = fc_w_ref[...]                               # (T, H_pad)
        logits_acc = jnp.zeros((B_pad, H_pad), jnp.float32)

        cur = x_ref[...]                                   # layer input, lives in vregs
        for l in range(num_layers):
            w_ih_t = layer_refs[3 * l][...]                # (Din_pad, H_pad)
            w_hh_t = layer_refs[3 * l + 1][...]            # (H_pad, H_pad), loop-invariant
            bias = layer_refs[3 * l + 2][...]              # (1, H_pad)
            din_pad = w_ih_t.shape[0]

            # Hoisted input projection for the whole sequence: ONE MXU matmul,
            # bias folded in.  Stays in vregs; indexed with static t below.
            proj = jnp.dot(cur.reshape(T * B_pad, din_pad), w_ih_t,
                           preferred_element_type=jnp.float32) + bias
            proj = proj.reshape(T, B_pad, H_pad)

            is_last = (l == num_layers - 1)
            h = jnp.zeros((B_pad, H_pad), jnp.float32)
            outs = []
            for t in range(T):                             # fully unrolled, static t
                pre = proj[t] + jnp.dot(h, w_hh_t,
                                        preferred_element_type=jnp.float32)
                h = jnp.maximum(pre, 0.0)                  # nonlinearity='relu'
                if is_last:
                    # FC reduction folded into the recurrence: no (T,B,H) output
                    logits_acc = logits_acc + h * fc_w[t:t + 1, :]
                else:
                    outs.append(h)
            if not is_last:
                cur = jnp.stack(outs, axis=0)              # next layer's input (vregs)

        # Finalize FC: lane reduce + bias  ->  logits z (B_pad, 1)
        z = jnp.sum(logits_acc, axis=1, keepdims=True) + fc_b_ref[...]

        y = y_ref[...]
        mask = (lax.broadcasted_iota(jnp.int32, z.shape, 0) < batch
                ).astype(jnp.float32)                      # mask padded batch rows

        # BCEWithLogitsLoss, mean reduction, numerically stable form
        loss_elem = jnp.maximum(z, 0.0) - z * y + jnp.log1p(jnp.exp(-jnp.abs(z)))
        loss = jnp.sum(loss_elem * mask) * inv_b

        # sigmoid(z) > 0.5  <=>  z > 0
        correct = ((z > 0.0) == (y > 0.5)).astype(jnp.float32)
        acc = jnp.sum(correct * mask) * inv_b

        # Pack everything into one lane-dense (B_pad, 128) block:
        #   column 0 = per-row logits, column 1 = loss, column 2 = accuracy.
        col = lax.broadcasted_iota(jnp.int32, (B_pad, 128), 1)
        packed = jnp.where(col == 0, jnp.broadcast_to(z, (B_pad, 128)),
                 jnp.where(col == 1, loss,
                 jnp.where(col == 2, acc, 0.0)))
        out_ref[...] = packed

    return kernel


def fused_forward_call(x_tbd, layer_params, fc_w_th, fc_b, labels_pad, batch):
    T, B_pad, _ = x_tbd.shape
    num_layers = len(layer_params)
    flat_weights = [w for lp in layer_params for w in lp]
    n_in = 1 + 3 * num_layers + 3
    return pl.pallas_call(
        _make_fused_kernel(num_layers, T, batch),
        out_shape=jax.ShapeDtypeStruct((B_pad, 128), jnp.float32),
        in_specs=[pl.BlockSpec(memory_space=pltpu.MemorySpace.VMEM)] * n_in,
        out_specs=pl.BlockSpec(memory_space=pltpu.MemorySpace.VMEM),
    )(x_tbd, *flat_weights, fc_w_th, fc_b, labels_pad)


# ----------------------------------------------------------------------------
# One-time weight preparation: transpose + pad into kernel layout.
# ----------------------------------------------------------------------------
def prepare_params(params, sequence_length):
    prepared = {"rnn": []}
    for (w_ih, w_hh, b_ih, b_hh) in params["rnn"]:
        H, D = w_ih.shape
        H_pad, D_pad = _round_up(H, 128), _round_up(D, 128)
        w_ih_t = jnp.pad(w_ih.T, ((0, D_pad - D), (0, H_pad - H)))   # (D_pad, H_pad)
        w_hh_t = jnp.pad(w_hh.T, ((0, H_pad - H), (0, H_pad - H)))   # (H_pad, H_pad)
        bias = jnp.pad(b_ih + b_hh, ((0, 0), (0, H_pad - H)))        # (1, H_pad)
        prepared["rnn"].append((w_ih_t, w_hh_t, bias))
    H = params["rnn"][-1][1].shape[0]
    H_pad = _round_up(H, 128)
    fc_w_th = params["fc_w"].reshape(sequence_length, H)   # output_size == 1
    prepared["fc_w_th"] = jnp.pad(fc_w_th, ((0, 0), (0, H_pad - H)))
    prepared["fc_b"] = params["fc_b"].reshape(1, 1)
    return prepared


# ----------------------------------------------------------------------------
# Full StandardRNN forward (one pallas_call).
# ----------------------------------------------------------------------------
def standard_rnn_forward(x_bti, labels, prepared):
    # x_bti: (B, T, I), batch_first=True like the PyTorch module.
    B, T, I = x_bti.shape
    B_pad = _round_up(B, 8)
    D_pad = prepared["rnn"][0][0].shape[0]

    # Time-major + zero pad (single fused XLA transpose+pad).
    x = jnp.transpose(x_bti, (1, 0, 2))
    x = jnp.pad(x, ((0, 0), (0, B_pad - B), (0, D_pad - I)))

    labels_pad = jnp.pad(labels.astype(jnp.float32).reshape(B, 1),
                         ((0, B_pad - B), (0, 0)))

    packed = fused_forward_call(x, prepared["rnn"], prepared["fc_w_th"],
                                prepared["fc_b"], labels_pad, batch=B)
    logits = packed[:B, 0]
    loss = packed[0, 1]
    acc = packed[0, 2]
    return logits, loss, acc


# ----------------------------------------------------------------------------
# Pure-JAX reference for the sanity check (uses the original unpadded params)
# ----------------------------------------------------------------------------
def reference_forward(x_bti, labels, params):
    x = x_bti
    B, T, _ = x.shape
    for (w_ih, w_hh, b_ih, b_hh) in params["rnn"]:
        H = w_hh.shape[0]
        h = jnp.zeros((B, H), jnp.float32)
        outs = []
        for t in range(T):
            h = jnp.maximum(x[:, t] @ w_ih.T + b_ih[0] + h @ w_hh.T + b_hh[0], 0.0)
            outs.append(h)
        x = jnp.stack(outs, axis=1)
    flat = x.reshape(B, -1)
    z = flat @ params["fc_w"][0] + params["fc_b"][0, 0]
    y = labels.astype(jnp.float32)
    loss = jnp.mean(jnp.maximum(z, 0.0) - z * y + jnp.log1p(jnp.exp(-jnp.abs(z))))
    acc = jnp.mean(((jax.nn.sigmoid(z) > 0.5) == (y > 0.5)).astype(jnp.float32))
    return z, loss, acc


def init_params(key, input_size, hidden_size, num_layers, sequence_length, output_size):
    k = 1.0 / jnp.sqrt(hidden_size)
    params = {"rnn": []}
    for layer in range(num_layers):
        d_in = input_size if layer == 0 else hidden_size
        key, k1, k2, k3, k4 = jax.random.split(key, 5)
        w_ih = jax.random.uniform(k1, (hidden_size, d_in), jnp.float32, -k, k)
        w_hh = jax.random.uniform(k2, (hidden_size, hidden_size), jnp.float32, -k, k)
        b_ih = jax.random.uniform(k3, (1, hidden_size), jnp.float32, -k, k)
        b_hh = jax.random.uniform(k4, (1, hidden_size), jnp.float32, -k, k)
        params["rnn"].append((w_ih, w_hh, b_ih, b_hh))
    key, k5, k6 = jax.random.split(key, 3)
    d_fc = hidden_size * sequence_length
    kf = 1.0 / jnp.sqrt(d_fc)
    params["fc_w"] = jax.random.uniform(k5, (output_size, d_fc), jnp.float32, -kf, kf)
    params["fc_b"] = jax.random.uniform(k6, (1, output_size), jnp.float32, -kf, kf)
    return params


if __name__ == "__main__":
    # Small shapes consistent with the module's forward
    B, T, I, H, L = 2, 8, 4, 32, 2
    key = jax.random.PRNGKey(0)
    key, kx, ky, kp = jax.random.split(key, 4)

    x = jax.random.normal(kx, (B, T, I), jnp.float32)            # inputs['sequence']
    labels = jax.random.bernoulli(ky, 0.5, (B,)).astype(jnp.int32)
    params = init_params(kp, I, H, L, T, output_size=1)
    prepared = prepare_params(params, sequence_length=T)         # one-time weight prep

    fwd = jax.jit(standard_rnn_forward)
    logits, loss, acc = fwd(x, labels, prepared)
    jax.block_until_ready((logits, loss, acc))

    # sanity check against pure-JAX reference
    ref_logits, ref_loss, ref_acc = reference_forward(x, labels, params)
    assert jnp.allclose(logits, ref_logits, atol=1e-4, rtol=1e-4)
    assert jnp.allclose(loss, ref_loss, atol=1e-4, rtol=1e-4)
    assert jnp.allclose(acc, ref_acc)

    print("KERNEL_OK")
</pallas_src>

<mosaic_0001>
module attributes {stable_mosaic.version = 11 : i64} {
  func.func @kernel(%arg0: memref<8x8x128xf32, #tpu.memory_space<vmem>>, %arg1: memref<128x128xf32, #tpu.memory_space<vmem>>, %arg2: memref<128x128xf32, #tpu.memory_space<vmem>>, %arg3: memref<1x128xf32, #tpu.memory_space<vmem>>, %arg4: memref<128x128xf32, #tpu.memory_space<vmem>>, %arg5: memref<128x128xf32, #tpu.memory_space<vmem>>, %arg6: memref<1x128xf32, #tpu.memory_space<vmem>>, %arg7: memref<8x128xf32, #tpu.memory_space<vmem>>, %arg8: memref<1x1xf32, #tpu.memory_space<vmem>>, %arg9: memref<8x1xf32, #tpu.memory_space<vmem>>, %arg10: memref<8x128xf32, #tpu.memory_space<vmem>>) attributes {dimension_semantics = [], scalar_prefetch = 0 : i64, scratch_operands = 0 : i64, tpu.core_type = #tpu.core_type<tc>} {
    %c0 = arith.constant 0 : index
    %c0_0 = arith.constant 0 : index
    %0 = vector.load %arg7[%c0, %c0_0] : memref<8x128xf32, #tpu.memory_space<vmem>>, vector<8x128xf32>
    %cst = arith.constant 0.000000e+00 : f32
    %1 = vector.broadcast %cst : f32 to vector<8x128xf32>
    %c0_1 = arith.constant 0 : index
    %c0_2 = arith.constant 0 : index
    %c0_3 = arith.constant 0 : index
    %2 = vector.load %arg0[%c0_1, %c0_2, %c0_3] : memref<8x8x128xf32, #tpu.memory_space<vmem>>, vector<8x8x128xf32>
    %c0_4 = arith.constant 0 : index
    %c0_5 = arith.constant 0 : index
    %3 = vector.load %arg1[%c0_4, %c0_5] : memref<128x128xf32, #tpu.memory_space<vmem>>, vector<128x128xf32>
    %c0_6 = arith.constant 0 : index
    %c0_7 = arith.constant 0 : index
    %4 = vector.load %arg2[%c0_6, %c0_7] : memref<128x128xf32, #tpu.memory_space<vmem>>, vector<128x128xf32>
    %c0_8 = arith.constant 0 : index
    %c0_9 = arith.constant 0 : index
    %5 = vector.load %arg3[%c0_8, %c0_9] : memref<1x128xf32, #tpu.memory_space<vmem>>, vector<1x128xf32>
    %6 = vector.shape_cast %2 : vector<8x8x128xf32> to vector<64x128xf32>
    %cst_10 = arith.constant dense<0.000000e+00> : vector<64x128xf32>
    %7 = tpu.matmul %6, %3, %cst_10 {dimension_numbers = #tpu.dot_dimension_numbers<[1], [0], [0], [1], [0, 0, 1, 1], [], []>} : vector<64x128xf32>, vector<128x128xf32>, vector<64x128xf32> -> vector<64x128xf32>
    %8 = vector.broadcast %5 : vector<1x128xf32> to vector<64x128xf32>
    %9 = arith.addf %7, %8 : vector<64x128xf32>
    %10 = vector.shape_cast %9 : vector<64x128xf32> to vector<8x8x128xf32>
    %cst_11 = arith.constant 0.000000e+00 : f32
    %11 = vector.broadcast %cst_11 : f32 to vector<8x128xf32>
    %12 = vector.extract_strided_slice %10 {offsets = [0, 0, 0], sizes = [1, 8, 128], strides = [1, 1, 1]} : vector<8x8x128xf32> to vector<1x8x128xf32>
    %13 = vector.shape_cast %12 : vector<1x8x128xf32> to vector<8x128xf32>
    %cst_12 = arith.constant dense<0.000000e+00> : vector<8x128xf32>
    %14 = tpu.matmul %11, %4, %cst_12 {dimension_numbers = #tpu.dot_dimension_numbers<[1], [0], [0], [1], [0, 0, 1, 1], [], []>} : vector<8x128xf32>, vector<128x128xf32>, vector<8x128xf32> -> vector<8x128xf32>
    %15 = arith.addf %13, %14 : vector<8x128xf32>
    %cst_13 = arith.constant 0.000000e+00 : f32
    %16 = vector.broadcast %cst_13 : f32 to vector<8x128xf32>
    %17 = arith.maximumf %15, %16 : vector<8x128xf32>
    %18 = vector.extract_strided_slice %10 {offsets = [1, 0, 0], sizes = [1, 8, 128], strides = [1, 1, 1]} : vector<8x8x128xf32> to vector<1x8x128xf32>
    %19 = vector.shape_cast %18 : vector<1x8x128xf32> to vector<8x128xf32>
    %cst_14 = arith.constant dense<0.000000e+00> : vector<8x128xf32>
    %20 = tpu.matmul %17, %4, %cst_14 {dimension_numbers = #tpu.dot_dimension_numbers<[1], [0], [0], [1], [0, 0, 1, 1], [], []>} : vector<8x128xf32>, vector<128x128xf32>, vector<8x128xf32> -> vector<8x128xf32>
    %21 = arith.addf %19, %20 : vector<8x128xf32>
    %cst_15 = arith.constant 0.000000e+00 : f32
    %22 = vector.broadcast %cst_15 : f32 to vector<8x128xf32>
    %23 = arith.maximumf %21, %22 : vector<8x128xf32>
    %24 = vector.extract_strided_slice %10 {offsets = [2, 0, 0], sizes = [1, 8, 128], strides = [1, 1, 1]} : vector<8x8x128xf32> to vector<1x8x128xf32>
    %25 = vector.shape_cast %24 : vector<1x8x128xf32> to vector<8x128xf32>
    %cst_16 = arith.constant dense<0.000000e+00> : vector<8x128xf32>
    %26 = tpu.matmul %23, %4, %cst_16 {dimension_numbers = #tpu.dot_dimension_numbers<[1], [0], [0], [1], [0, 0, 1, 1], [], []>} : vector<8x128xf32>, vector<128x128xf32>, vector<8x128xf32> -> vector<8x128xf32>
    %27 = arith.addf %25, %26 : vector<8x128xf32>
    %cst_17 = arith.constant 0.000000e+00 : f32
    %28 = vector.broadcast %cst_17 : f32 to vector<8x128xf32>
    %29 = arith.maximumf %27, %28 : vector<8x128xf32>
    %30 = vector.extract_strided_slice %10 {offsets = [3, 0, 0], sizes = [1, 8, 128], strides = [1, 1, 1]} : vector<8x8x128xf32> to vector<1x8x128xf32>
    %31 = vector.shape_cast %30 : vector<1x8x128xf32> to vector<8x128xf32>
    %cst_18 = arith.constant dense<0.000000e+00> : vector<8x128xf32>
    %32 = tpu.matmul %29, %4, %cst_18 {dimension_numbers = #tpu.dot_dimension_numbers<[1], [0], [0], [1], [0, 0, 1, 1], [], []>} : vector<8x128xf32>, vector<128x128xf32>, vector<8x128xf32> -> vector<8x128xf32>
    %33 = arith.addf %31, %32 : vector<8x128xf32>
    %cst_19 = arith.constant 0.000000e+00 : f32
    %34 = vector.broadcast %cst_19 : f32 to vector<8x128xf32>
    %35 = arith.maximumf %33, %34 : vector<8x128xf32>
    %36 = vector.extract_strided_slice %10 {offsets = [4, 0, 0], sizes = [1, 8, 128], strides = [1, 1, 1]} : vector<8x8x128xf32> to vector<1x8x128xf32>
    %37 = vector.shape_cast %36 : vector<1x8x128xf32> to vector<8x128xf32>
    %cst_20 = arith.constant dense<0.000000e+00> : vector<8x128xf32>
    %38 = tpu.matmul %35, %4, %cst_20 {dimension_numbers = #tpu.dot_dimension_numbers<[1], [0], [0], [1], [0, 0, 1, 1], [], []>} : vector<8x128xf32>, vector<128x128xf32>, vector<8x128xf32> -> vector<8x128xf32>
    %39 = arith.addf %37, %38 : vector<8x128xf32>
    %cst_21 = arith.constant 0.000000e+00 : f32
    %40 = vector.broadcast %cst_21 : f32 to vector<8x128xf32>
    %41 = arith.maximumf %39, %40 : vector<8x128xf32>
    %42 = vector.extract_strided_slice %10 {offsets = [5, 0, 0], sizes = [1, 8, 128], strides = [1, 1, 1]} : vector<8x8x128xf32> to vector<1x8x128xf32>
    %43 = vector.shape_cast %42 : vector<1x8x128xf32> to vector<8x128xf32>
    %cst_22 = arith.constant dense<0.000000e+00> : vector<8x128xf32>
    %44 = tpu.matmul %41, %4, %cst_22 {dimension_numbers = #tpu.dot_dimension_numbers<[1], [0], [0], [1], [0, 0, 1, 1], [], []>} : vector<8x128xf32>, vector<128x128xf32>, vector<8x128xf32> -> vector<8x128xf32>
    %45 = arith.addf %43, %44 : vector<8x128xf32>
    %cst_23 = arith.constant 0.000000e+00 : f32
    %46 = vector.broadcast %cst_23 : f32 to vector<8x128xf32>
    %47 = arith.maximumf %45, %46 : vector<8x128xf32>
    %48 = vector.extract_strided_slice %10 {offsets = [6, 0, 0], sizes = [1, 8, 128], strides = [1, 1, 1]} : vector<8x8x128xf32> to vector<1x8x128xf32>
    %49 = vector.shape_cast %48 : vector<1x8x128xf32> to vector<8x128xf32>
    %cst_24 = arith.constant dense<0.000000e+00> : vector<8x128xf32>
    %50 = tpu.matmul %47, %4, %cst_24 {dimension_numbers = #tpu.dot_dimension_numbers<[1], [0], [0], [1], [0, 0, 1, 1], [], []>} : vector<8x128xf32>, vector<128x128xf32>, vector<8x128xf32> -> vector<8x128xf32>
    %51 = arith.addf %49, %50 : vector<8x128xf32>
    %cst_25 = arith.constant 0.000000e+00 : f32
    %52 = vector.broadcast %cst_25 : f32 to vector<8x128xf32>
    %53 = arith.maximumf %51, %52 : vector<8x128xf32>
    %54 = vector.extract_strided_slice %10 {offsets = [7, 0, 0], sizes = [1, 8, 128], strides = [1, 1, 1]} : vector<8x8x128xf32> to vector<1x8x128xf32>
    %55 = vector.shape_cast %54 : vector<1x8x128xf32> to vector<8x128xf32>
    %cst_26 = arith.constant dense<0.000000e+00> : vector<8x128xf32>
    %56 = tpu.matmul %53, %4, %cst_26 {dimension_numbers = #tpu.dot_dimension_numbers<[1], [0], [0], [1], [0, 0, 1, 1], [], []>} : vector<8x128xf32>, vector<128x128xf32>, vector<8x128xf32> -> vector<8x128xf32>
    %57 = arith.addf %55, %56 : vector<8x128xf32>
    %cst_27 = arith.constant 0.000000e+00 : f32
    %58 = vector.broadcast %cst_27 : f32 to vector<8x128xf32>
    %59 = arith.maximumf %57, %58 : vector<8x128xf32>
    %60 = vector.shape_cast %17 : vector<8x128xf32> to vector<1x8x128xf32>
    %61 = vector.shape_cast %23 : vector<8x128xf32> to vector<1x8x128xf32>
    %62 = vector.shape_cast %29 : vector<8x128xf32> to vector<1x8x128xf32>
    %63 = vector.shape_cast %35 : vector<8x128xf32> to vector<1x8x128xf32>
    %64 = vector.shape_cast %41 : vector<8x128xf32> to vector<1x8x128xf32>
    %65 = vector.shape_cast %47 : vector<8x128xf32> to vector<1x8x128xf32>
    %66 = vector.shape_cast %53 : vector<8x128xf32> to vector<1x8x128xf32>
    %67 = vector.shape_cast %59 : vector<8x128xf32> to vector<1x8x128xf32>
    %68 = tpu.concatenate %60, %61, %62, %63, %64, %65, %66, %67 in 0 : vector<1x8x128xf32>, vector<1x8x128xf32>, vector<1x8x128xf32>, vector<1x8x128xf32>, vector<1x8x128xf32>, vector<1x8x128xf32>, vector<1x8x128xf32>, vector<1x8x128xf32> -> vector<8x8x128xf32>
    %c0_28 = arith.constant 0 : index
    %c0_29 = arith.constant 0 : index
    %69 = vector.load %arg4[%c0_28, %c0_29] : memref<128x128xf32, #tpu.memory_space<vmem>>, vector<128x128xf32>
    %c0_30 = arith.constant 0 : index
    %c0_31 = arith.constant 0 : index
    %70 = vector.load %arg5[%c0_30, %c0_31] : memref<128x128xf32, #tpu.memory_space<vmem>>, vector<128x128xf32>
    %c0_32 = arith.constant 0 : index
    %c0_33 = arith.constant 0 : index
    %71 = vector.load %arg6[%c0_32, %c0_33] : memref<1x128xf32, #tpu.memory_space<vmem>>, vector<1x128xf32>
    %72 = vector.shape_cast %68 : vector<8x8x128xf32> to vector<64x128xf32>
    %cst_34 = arith.constant dense<0.000000e+00> : vector<64x128xf32>
    %73 = tpu.matmul %72, %69, %cst_34 {dimension_numbers = #tpu.dot_dimension_numbers<[1], [0], [0], [1], [0, 0, 1, 1], [], []>} : vector<64x128xf32>, vector<128x128xf32>, vector<64x128xf32> -> vector<64x128xf32>
    %74 = vector.broadcast %71 : vector<1x128xf32> to vector<64x128xf32>
    %75 = arith.addf %73, %74 : vector<64x128xf32>
    %76 = vector.shape_cast %75 : vector<64x128xf32> to vector<8x8x128xf32>
    %cst_35 = arith.constant 0.000000e+00 : f32
    %77 = vector.broadcast %cst_35 : f32 to vector<8x128xf32>
    %78 = vector.extract_strided_slice %76 {offsets = [0, 0, 0], sizes = [1, 8, 128], strides = [1, 1, 1]} : vector<8x8x128xf32> to vector<1x8x128xf32>
    %79 = vector.shape_cast %78 : vector<1x8x128xf32> to vector<8x128xf32>
    %cst_36 = arith.constant dense<0.000000e+00> : vector<8x128xf32>
    %80 = tpu.matmul %77, %70, %cst_36 {dimension_numbers = #tpu.dot_dimension_numbers<[1], [0], [0], [1], [0, 0, 1, 1], [], []>} : vector<8x128xf32>, vector<128x128xf32>, vector<8x128xf32> -> vector<8x128xf32>
    %81 = arith.addf %79, %80 : vector<8x128xf32>
    %cst_37 = arith.constant 0.000000e+00 : f32
    %82 = vector.broadcast %cst_37 : f32 to vector<8x128xf32>
    %83 = arith.maximumf %81, %82 : vector<8x128xf32>
    %84 = vector.extract_strided_slice %0 {offsets = [0, 0], sizes = [1, 128], strides = [1, 1]} : vector<8x128xf32> to vector<1x128xf32>
    %85 = vector.broadcast %84 : vector<1x128xf32> to vector<8x128xf32>
    %86 = arith.mulf %83, %85 : vector<8x128xf32>
    %87 = arith.addf %1, %86 : vector<8x128xf32>
    %88 = vector.extract_strided_slice %76 {offsets = [1, 0, 0], sizes = [1, 8, 128], strides = [1, 1, 1]} : vector<8x8x128xf32> to vector<1x8x128xf32>
    %89 = vector.shape_cast %88 : vector<1x8x128xf32> to vector<8x128xf32>
    %cst_38 = arith.constant dense<0.000000e+00> : vector<8x128xf32>
    %90 = tpu.matmul %83, %70, %cst_38 {dimension_numbers = #tpu.dot_dimension_numbers<[1], [0], [0], [1], [0, 0, 1, 1], [], []>} : vector<8x128xf32>, vector<128x128xf32>, vector<8x128xf32> -> vector<8x128xf32>
    %91 = arith.addf %89, %90 : vector<8x128xf32>
    %cst_39 = arith.constant 0.000000e+00 : f32
    %92 = vector.broadcast %cst_39 : f32 to vector<8x128xf32>
    %93 = arith.maximumf %91, %92 : vector<8x128xf32>
    %94 = vector.extract_strided_slice %0 {offsets = [1, 0], sizes = [1, 128], strides = [1, 1]} : vector<8x128xf32> to vector<1x128xf32>
    %95 = vector.broadcast %94 : vector<1x128xf32> to vector<8x128xf32>
    %96 = arith.mulf %93, %95 : vector<8x128xf32>
    %97 = arith.addf %87, %96 : vector<8x128xf32>
    %98 = vector.extract_strided_slice %76 {offsets = [2, 0, 0], sizes = [1, 8, 128], strides = [1, 1, 1]} : vector<8x8x128xf32> to vector<1x8x128xf32>
    %99 = vector.shape_cast %98 : vector<1x8x128xf32> to vector<8x128xf32>
    %cst_40 = arith.constant dense<0.000000e+00> : vector<8x128xf32>
    %100 = tpu.matmul %93, %70, %cst_40 {dimension_numbers = #tpu.dot_dimension_numbers<[1], [0], [0], [1], [0, 0, 1, 1], [], []>} : vector<8x128xf32>, vector<128x128xf32>, vector<8x128xf32> -> vector<8x128xf32>
    %101 = arith.addf %99, %100 : vector<8x128xf32>
    %cst_41 = arith.constant 0.000000e+00 : f32
    %102 = vector.broadcast %cst_41 : f32 to vector<8x128xf32>
    %103 = arith.maximumf %101, %102 : vector<8x128xf32>
    %104 = vector.extract_strided_slice %0 {offsets = [2, 0], sizes = [1, 128], strides = [1, 1]} : vector<8x128xf32> to vector<1x128xf32>
    %105 = vector.broadcast %104 : vector<1x128xf32> to vector<8x128xf32>
    %106 = arith.mulf %103, %105 : vector<8x128xf32>
    %107 = arith.addf %97, %106 : vector<8x128xf32>
    %108 = vector.extract_strided_slice %76 {offsets = [3, 0, 0], sizes = [1, 8, 128], strides = [1, 1, 1]} : vector<8x8x128xf32> to vector<1x8x128xf32>
    %109 = vector.shape_cast %108 : vector<1x8x128xf32> to vector<8x128xf32>
    %cst_42 = arith.constant dense<0.000000e+00> : vector<8x128xf32>
    %110 = tpu.matmul %103, %70, %cst_42 {dimension_numbers = #tpu.dot_dimension_numbers<[1], [0], [0], [1], [0, 0, 1, 1], [], []>} : vector<8x128xf32>, vector<128x128xf32>, vector<8x128xf32> -> vector<8x128xf32>
    %111 = arith.addf %109, %110 : vector<8x128xf32>
    %cst_43 = arith.constant 0.000000e+00 : f32
    %112 = vector.broadcast %cst_43 : f32 to vector<8x128xf32>
    %113 = arith.maximumf %111, %112 : vector<8x128xf32>
    %114 = vector.extract_strided_slice %0 {offsets = [3, 0], sizes = [1, 128], strides = [1, 1]} : vector<8x128xf32> to vector<1x128xf32>
    %115 = vector.broadcast %114 : vector<1x128xf32> to vector<8x128xf32>
    %116 = arith.mulf %113, %115 : vector<8x128xf32>
    %117 = arith.addf %107, %116 : vector<8x128xf32>
    %118 = vector.extract_strided_slice %76 {offsets = [4, 0, 0], sizes = [1, 8, 128], strides = [1, 1, 1]} : vector<8x8x128xf32> to vector<1x8x128xf32>
    %119 = vector.shape_cast %118 : vector<1x8x128xf32> to vector<8x128xf32>
    %cst_44 = arith.constant dense<0.000000e+00> : vector<8x128xf32>
    %120 = tpu.matmul %113, %70, %cst_44 {dimension_numbers = #tpu.dot_dimension_numbers<[1], [0], [0], [1], [0, 0, 1, 1], [], []>} : vector<8x128xf32>, vector<128x128xf32>, vector<8x128xf32> -> vector<8x128xf32>
    %121 = arith.addf %119, %120 : vector<8x128xf32>
    %cst_45 = arith.constant 0.000000e+00 : f32
    %122 = vector.broadcast %cst_45 : f32 to vector<8x128xf32>
    %123 = arith.maximumf %121, %122 : vector<8x128xf32>
    %124 = vector.extract_strided_slice %0 {offsets = [4, 0], sizes = [1, 128], strides = [1, 1]} : vector<8x128xf32> to vector<1x128xf32>
    %125 = vector.broadcast %124 : vector<1x128xf32> to vector<8x128xf32>
    %126 = arith.mulf %123, %125 : vector<8x128xf32>
    %127 = arith.addf %117, %126 : vector<8x128xf32>
    %128 = vector.extract_strided_slice %76 {offsets = [5, 0, 0], sizes = [1, 8, 128], strides = [1, 1, 1]} : vector<8x8x128xf32> to vector<1x8x128xf32>
    %129 = vector.shape_cast %128 : vector<1x8x128xf32> to vector<8x128xf32>
    %cst_46 = arith.constant dense<0.000000e+00> : vector<8x128xf32>
    %130 = tpu.matmul %123, %70, %cst_46 {dimension_numbers = #tpu.dot_dimension_numbers<[1], [0], [0], [1], [0, 0, 1, 1], [], []>} : vector<8x128xf32>, vector<128x128xf32>, vector<8x128xf32> -> vector<8x128xf32>
    %131 = arith.addf %129, %130 : vector<8x128xf32>
    %cst_47 = arith.constant 0.000000e+00 : f32
    %132 = vector.broadcast %cst_47 : f32 to vector<8x128xf32>
    %133 = arith.maximumf %131, %132 : vector<8x128xf32>
    %134 = vector.extract_strided_slice %0 {offsets = [5, 0], sizes = [1, 128], strides = [1, 1]} : vector<8x128xf32> to vector<1x128xf32>
    %135 = vector.broadcast %134 : vector<1x128xf32> to vector<8x128xf32>
    %136 = arith.mulf %133, %135 : vector<8x128xf32>
    %137 = arith.addf %127, %136 : vector<8x128xf32>
    %138 = vector.extract_strided_slice %76 {offsets = [6, 0, 0], sizes = [1, 8, 128], strides = [1, 1, 1]} : vector<8x8x128xf32> to vector<1x8x128xf32>
    %139 = vector.shape_cast %138 : vector<1x8x128xf32> to vector<8x128xf32>
    %cst_48 = arith.constant dense<0.000000e+00> : vector<8x128xf32>
    %140 = tpu.matmul %133, %70, %cst_48 {dimension_numbers = #tpu.dot_dimension_numbers<[1], [0], [0], [1], [0, 0, 1, 1], [], []>} : vector<8x128xf32>, vector<128x128xf32>, vector<8x128xf32> -> vector<8x128xf32>
    %141 = arith.addf %139, %140 : vector<8x128xf32>
    %cst_49 = arith.constant 0.000000e+00 : f32
    %142 = vector.broadcast %cst_49 : f32 to vector<8x128xf32>
    %143 = arith.maximumf %141, %142 : vector<8x128xf32>
    %144 = vector.extract_strided_slice %0 {offsets = [6, 0], sizes = [1, 128], strides = [1, 1]} : vector<8x128xf32> to vector<1x128xf32>
    %145 = vector.broadcast %144 : vector<1x128xf32> to vector<8x128xf32>
    %146 = arith.mulf %143, %145 : vector<8x128xf32>
    %147 = arith.addf %137, %146 : vector<8x128xf32>
    %148 = vector.extract_strided_slice %76 {offsets = [7, 0, 0], sizes = [1, 8, 128], strides = [1, 1, 1]} : vector<8x8x128xf32> to vector<1x8x128xf32>
    %149 = vector.shape_cast %148 : vector<1x8x128xf32> to vector<8x128xf32>
    %cst_50 = arith.constant dense<0.000000e+00> : vector<8x128xf32>
    %150 = tpu.matmul %143, %70, %cst_50 {dimension_numbers = #tpu.dot_dimension_numbers<[1], [0], [0], [1], [0, 0, 1, 1], [], []>} : vector<8x128xf32>, vector<128x128xf32>, vector<8x128xf32> -> vector<8x128xf32>
    %151 = arith.addf %149, %150 : vector<8x128xf32>
    %cst_51 = arith.constant 0.000000e+00 : f32
    %152 = vector.broadcast %cst_51 : f32 to vector<8x128xf32>
    %153 = arith.maximumf %151, %152 : vector<8x128xf32>
    %154 = vector.extract_strided_slice %0 {offsets = [7, 0], sizes = [1, 128], strides = [1, 1]} : vector<8x128xf32> to vector<1x128xf32>
    %155 = vector.broadcast %154 : vector<1x128xf32> to vector<8x128xf32>
    %156 = arith.mulf %153, %155 : vector<8x128xf32>
    %157 = arith.addf %147, %156 : vector<8x128xf32>
    %cst_52 = arith.constant dense<0.000000e+00> : vector<8xf32>
    %158 = vector.multi_reduction <add>, %157, %cst_52 [1] : vector<8x128xf32> to vector<8xf32>
    %159 = vector.shape_cast %158 : vector<8xf32> to vector<8x1xf32>
    %c0_53 = arith.constant 0 : index
    %c0_54 = arith.constant 0 : index
    %160 = vector.load %arg8[%c0_53, %c0_54] : memref<1x1xf32, #tpu.memory_space<vmem>>, vector<1x1xf32>
    %161 = vector.broadcast %160 : vector<1x1xf32> to vector<8x1xf32>
    %162 = arith.addf %159, %161 : vector<8x1xf32>
    %c0_55 = arith.constant 0 : index
    %c0_56 = arith.constant 0 : index
    %163 = vector.load %arg9[%c0_55, %c0_56] : memref<8x1xf32, #tpu.memory_space<vmem>>, vector<8x1xf32>
    %164 = tpu.iota {dimensions = array<i32: 0>} : vector<8x1xi32>
    %c2_i32 = arith.constant 2 : i32
    %165 = vector.broadcast %c2_i32 : i32 to vector<8x1xi32>
    %166 = arith.cmpi slt, %164, %165 : vector<8x1xi32>
    %167 = arith.extui %166 : vector<8x1xi1> to vector<8x1xi32>
    %168 = arith.sitofp %167 : vector<8x1xi32> to vector<8x1xf32>
    %cst_57 = arith.constant 0.000000e+00 : f32
    %169 = vector.broadcast %cst_57 : f32 to vector<8x1xf32>
    %170 = arith.maximumf %162, %169 : vector<8x1xf32>
    %171 = arith.mulf %162, %163 : vector<8x1xf32>
    %172 = arith.subf %170, %171 : vector<8x1xf32>
    %173 = math.absf %162 : vector<8x1xf32>
    %cst_58 = arith.constant 0.000000e+00 : f32
    %174 = vector.broadcast %cst_58 : f32 to vector<8x1xf32>
    %175 = arith.subf %174, %173 : vector<8x1xf32>
    %176 = math.exp %175 : vector<8x1xf32>
    %177 = math.log1p %176 : vector<8x1xf32>
    %178 = arith.addf %172, %177 : vector<8x1xf32>
    %179 = arith.mulf %178, %168 : vector<8x1xf32>
    %180 = vector.shape_cast %179 : vector<8x1xf32> to vector<1x8x1xf32>
    %cst_59 = arith.constant dense<0.000000e+00> : vector<1xf32>
    %181 = vector.multi_reduction <add>, %180, %cst_59 [1, 2] : vector<1x8x1xf32> to vector<1xf32>
    %182 = vector.shape_cast %181 : vector<1xf32> to vector<1x1x1xf32>
    %183 = vector.extract %182[0, 0, 0] : f32 from vector<1x1x1xf32>
    %cst_60 = arith.constant 5.000000e-01 : f32
    %184 = arith.mulf %183, %cst_60 : f32
    %cst_61 = arith.constant 0.000000e+00 : f32
    %185 = vector.broadcast %cst_61 : f32 to vector<8x1xf32>
    %186 = arith.cmpf ogt, %162, %185 : vector<8x1xf32>
    %cst_62 = arith.constant 5.000000e-01 : f32
    %187 = vector.broadcast %cst_62 : f32 to vector<8x1xf32>
    %188 = arith.cmpf ogt, %163, %187 : vector<8x1xf32>
    %189 = arith.xori %186, %188 : vector<8x1xi1>
    %cst_63 = arith.constant dense<true> : vector<8x1xi1>
    %190 = arith.xori %189, %cst_63 : vector<8x1xi1>
    %191 = arith.extui %190 : vector<8x1xi1> to vector<8x1xi32>
    %192 = arith.sitofp %191 : vector<8x1xi32> to vector<8x1xf32>
    %193 = arith.mulf %192, %168 : vector<8x1xf32>
    %194 = vector.shape_cast %193 : vector<8x1xf32> to vector<1x8x1xf32>
    %cst_64 = arith.constant dense<0.000000e+00> : vector<1xf32>
    %195 = vector.multi_reduction <add>, %194, %cst_64 [1, 2] : vector<1x8x1xf32> to vector<1xf32>
    %196 = vector.shape_cast %195 : vector<1xf32> to vector<1x1x1xf32>
    %197 = vector.extract %196[0, 0, 0] : f32 from vector<1x1x1xf32>
    %cst_65 = arith.constant 5.000000e-01 : f32
    %198 = arith.mulf %197, %cst_65 : f32
    %199 = tpu.iota {dimensions = array<i32: 1>} : vector<8x128xi32>
    %c0_i32 = arith.constant 0 : i32
    %200 = vector.broadcast %c0_i32 : i32 to vector<8x128xi32>
    %201 = arith.cmpi eq, %199, %200 : vector<8x128xi32>
    %202 = vector.shape_cast %162 : vector<8x1xf32> to vector<8x1xf32>
    %203 = vector.broadcast %202 : vector<8x1xf32> to vector<8x128xf32>
    %c1_i32 = arith.constant 1 : i32
    %204 = vector.broadcast %c1_i32 : i32 to vector<8x128xi32>
    %205 = arith.cmpi eq, %199, %204 : vector<8x128xi32>
    %c2_i32_66 = arith.constant 2 : i32
    %206 = vector.broadcast %c2_i32_66 : i32 to vector<8x128xi32>
    %207 = arith.cmpi eq, %199, %206 : vector<8x128xi32>
    %cst_67 = arith.constant 0.000000e+00 : f32
    %208 = vector.broadcast %198 : f32 to vector<8x128xf32>
    %209 = vector.broadcast %cst_67 : f32 to vector<8x128xf32>
    %210 = arith.select %207, %208, %209 : vector<8x128xi1>, vector<8x128xf32>
    %211 = vector.broadcast %184 : f32 to vector<8x128xf32>
    %212 = arith.select %205, %211, %210 : vector<8x128xi1>, vector<8x128xf32>
    %213 = arith.select %201, %203, %212 : vector<8x128xi1>, vector<8x128xf32>
    %c0_68 = arith.constant 0 : index
    %c0_69 = arith.constant 0 : index
    %214 = vector.load %arg10[%c0_68, %c0_69] : memref<8x128xf32, #tpu.memory_space<vmem>>, vector<8x128xf32>
    tpu.vector_store %arg10[%c0_68, %c0_69], %213 {strides = array<i32>} : memref<8x128xf32, #tpu.memory_space<vmem>>, vector<8x128xf32>,
    return
  }
}

</mosaic_0001>

<bundles_post_ra>
// kernel: standard_rnn_forward.1
= control target key start
LH: loop header
LB: loop body
LE: loop exit
PB: predicated region body
PF: predicated region fallthrough
CT: control target
= control target key end

     0   :  { %s3819_s0 = inlined_call_operand.vmem [shape: f32[8,8,128], index: 0, kind: input, shape index: {}]   ;;  %s3820_s1 = inlined_call_operand.vmem [shape: f32[128,128], index: 1, kind: input, shape index: {}]   ;;  %s3821_s2 = inlined_call_operand.hbm [shape: f32[128,128], index: 2, kind: input, shape index: {}]   ;;  %s3822_s3 = inlined_call_operand.vmem [shape: f32[1,128], index: 3, kind: input, shape index: {}]   ;;  %s3823_s4 = inlined_call_operand.hbm [shape: f32[128,128], index: 4, kind: input, shape index: {}]   ;;  %s3824_s5 = inlined_call_operand.hbm [shape: f32[128,128], index: 5, kind: input, shape index: {}]   ;;  %s3825_s6 = inlined_call_operand.vmem [shape: f32[1,128], index: 6, kind: input, shape index: {}]   ;;  %s3826_s7 = inlined_call_operand.vmem [shape: f32[8,128], index: 7, kind: input, shape index: {}]   ;;  %s3827_s8 = inlined_call_operand.<no memory space> [shape: f32[1,1], index: 8, kind: input, shape index: {}]   ;;  %s3828_s9 = inlined_call_operand.vmem [shape: f32[8,1], index: 9, kind: input, shape index: {}]   ;;  %s3829_s10 = inlined_call_operand.vmem [shape: f32[8,128], index: 10, kind: output, shape index: {}]  }
   0x1   :  { %v15_v0 = vstv %s3827_s8 }
   0x2   :  { %16 = vst [vmem:[#allocation2] sm:$0x1] %v15_v0 }
   0x3   :  { %17 = vsyncpa [#allocation4], 0 }
   0x4   :  { %18 = vsyncpa [#allocation6], 0  ;;  %s3172_s15 = smov [#allocation5]   ;;  %s3173_s17 = smov [#allocation3]  }
   0x5   :  { %s42_s16 = sshll.u32 %s3172_s15, 4  ;;  %s28_s18 = sshll.u32 %s3173_s17, 4  ;;  %s43_s16 = int_to_ptr.vmem [resolvable:$true] %s42_s16  ;;  %s3240_s18 = int_to_ptr.vmem [resolvable:$true] %s28_s18 }
   0x6   :  { %s3102_s21 = scalar_lea.hbm %s3823_s4, 2048 }
   0x7   :  { %p3103_p0 = scmp.ne.s32.totalorder %s3823_s4, %s3102_s21  ;;  %p3106_p1 = scmp.lt.u32.totalorder %s3102_s21, %s3823_s4 }
   0x9   :  { %p3108_p2 = pnand %p3106_p1, %p3103_p0 }
   0xb   :  { %3111 = shalt.err (!%p3108_p2)
}
   0xc   :  { %s3112_s25 = scalar_lea.vmem %s43_s16, 2048  ;;  %p3117_p4 = scmp.lt.s32.totalorder %s43_s16, %s43_s16 }
   0xd   :  { %p3113_p3 = scmp.ne.s32.totalorder %s43_s16, %s3112_s25  ;;  %p3118_p5 = scmp.lt.s32.totalorder %s3112_s25, %s3112_s25 }
   0xf   :  { %p3119_p6 = por %p3118_p5, %p3117_p4 }
  0x11   :  { %p3120_p7 = pnand %p3119_p6, %p3113_p3 }
  0x13   :  { %3123 = shalt.err (!%p3120_p7)
}
  0x14   :  { %s3174_s26 = smov 128   ;;  %s3175_s27 = smov 8  }
  0x15   :  { %48 = dma.hbm_to_vmem [thread:$0]  %s3823_s4, 2048, %s43_s16, [#allocation6], %s3174_s26, %s3174_s26, %s3175_s27  }
  0x16   :  { %s3124_s12 = scalar_lea.hbm %s3821_s2, 2048 }
  0x17   :  { %p3125_p8 = scmp.ne.s32.totalorder %s3821_s2, %s3124_s12  ;;  %p3128_p9 = scmp.lt.u32.totalorder %s3124_s12, %s3821_s2 }
  0x19   :  { %p3130_p10 = pnand %p3128_p9, %p3125_p8 }
  0x1b   :  { %3133 = shalt.err (!%p3130_p10)
}
  0x1c   :  { %s3134_s19 = scalar_lea.vmem %s3240_s18, 2048  ;;  %p3139_p12 = scmp.lt.s32.totalorder %s3240_s18, %s3240_s18 }
  0x1d   :  { %p3135_p11 = scmp.ne.s32.totalorder %s3240_s18, %s3134_s19  ;;  %p3140_p13 = scmp.lt.s32.totalorder %s3134_s19, %s3134_s19 }
  0x1f   :  { %p3141_p0 = por %p3140_p13, %p3139_p12 }
  0x21   :  { %p3142_p1 = pnand %p3141_p0, %p3135_p11 }
  0x23   :  { %3145 = shalt.err (!%p3142_p1)
}
  0x24   :  { %34 = dma.hbm_to_vmem [thread:$0]  %s3821_s2, 2048, %s3240_s18, [#allocation4], %s3174_s26, %s3174_s26, %s3175_s27  }
  0x25   :  { %s3176_s20 = smov [#allocation7]   ;;  %s3146_s24 = scalar_lea.hbm %s3824_s5, 2048 }
  0x26   :  { %s54_s21 = sshll.u32 %s3176_s20, 4  ;;  %p3147_p2 = scmp.ne.s32.totalorder %s3824_s5, %s3146_s24  ;;  %s55_s21 = int_to_ptr.vmem [resolvable:$true] %s54_s21 }
  0x27   :  { %p3150_p3 = scmp.lt.u32.totalorder %s3146_s24, %s3824_s5 }
  0x29   :  { %p3152_p4 = pnand %p3150_p3, %p3147_p2 }
  0x2b   :  { %3155 = shalt.err (!%p3152_p4)
}
  0x2c   :  { %s3156_s30 = scalar_lea.vmem %s55_s21, 2048  ;;  %p3161_p6 = scmp.lt.s32.totalorder %s55_s21, %s55_s21 }
  0x2d   :  { %p3157_p5 = scmp.ne.s32.totalorder %s55_s21, %s3156_s30  ;;  %p3162_p7 = scmp.lt.s32.totalorder %s3156_s30, %s3156_s30 }
  0x2f   :  { %p3163_p8 = por %p3162_p7, %p3161_p6 }
  0x31   :  { %p3164_p9 = pnand %p3163_p8, %p3157_p5 }
  0x33   :  { %3167 = shalt.err (!%p3164_p9)
}
  0x34   :  { %60 = dma.hbm_to_vmem [thread:$0]  %s3824_s5, 2048, %s55_s21, [#allocation6], %s3174_s26, %s3174_s26, %s3175_s27  }
  0x35   :  { %3168 = dma.done.wait [#allocation4], 2048  }
  0x36   :  { %3169 = vsyncadd [#allocation4], 4294965248 }
  0x37   :  { %3170 = dma.done.wait [#allocation6], 4096  }
  0x38   :  { %3171 = vsyncadd [#allocation6], 4294963200  ;;  %v3177_v1 = vmov 0.0|0.0   ;;  %vm3178_vm0 = vmmov 0   ;;  %v3179_v2 = vmov 0.0   ;;  %v87_v3 = vld [vmem:[%s3820_s1] sm:$0xff] }
  0x39   :  { %2666 = vmatprep.subr.bf16.mxu1 %v3177_v1  ;;  %2062 = vmatprep.mubr.msk.f32.mxu1 %vm3178_vm0, %v3179_v2  ;;  %v88_v4 = vld [vmem:[%s3820_s1 + $0x8] sm:$0xff]  ;;  %v89_v8 = vld [vmem:[%s3820_s1 + $0x10] sm:$0xff]  ;;  %v90_v9 = vld [vmem:[%s3820_s1 + $0x18] sm:$0xff]  ;;  %vm3181_vm5 = vmmov 1   ;;  %vm1609_vm7 = vcmask 7168  }
  0x3a   :  { %v103_v5 = vld [vmem:[#allocation3] sm:$0xff]  ;;  %v2634_v6 = vpack.c.bf16 %v88_v4, %v87_v3  ;;  %v104_v7 = vld [vmem:[#allocation3 + $0x8] sm:$0xff]  ;;  %v2638_v11 = vpack.c.bf16 %v90_v9, %v89_v8  ;;  %v105_v12 = vld [vmem:[#allocation3 + $0x10] sm:$0xff] }
  0x3b   :  { %v3307_v10 = vpack.c.bf16 %v104_v7, %v103_v5  ;;  %v106_v13 = vld [vmem:[#allocation3 + $0x18] sm:$0xff]  ;;  %v92_v15 = vld [vmem:[%s3820_s1 + $0x28] sm:$0xff]  ;;  %v93_v20 = vld [vmem:[%s3820_s1 + $0x30] sm:$0xff] }
  0x3c   :  { %v91_v14 = vld [vmem:[%s3820_s1 + $0x20] sm:$0xff]  ;;  %2635 = vmatprep.subr.bf16.mxu0 %v2634_v6  ;;  %v3316_v16 = vpack.c.bf16 %v106_v13, %v105_v12  ;;  %v108_v19 = vld [vmem:[#allocation3 + $0x28] sm:$0xff]  ;;  %v94_v21 = vld [vmem:[%s3820_s1 + $0x38] sm:$0xff] }
  0x3d   :  { %2637 = vmatpush3.bf16.msra.mxu0 %v2634_v6  ;;  %2668 = vmatpush3.bf16.msra.mxu1 %v3307_v10  ;;  %v2642_v17 = vpack.c.bf16 %v92_v15, %v91_v14  ;;  %v107_v18 = vld [vmem:[#allocation3 + $0x20] sm:$0xff]  ;;  %v2646_v23 = vpack.c.bf16 %v94_v21, %v93_v20  ;;  %v109_v24 = vld [vmem:[#allocation3 + $0x30] sm:$0xff]  ;;  %v110_v25 = vld [vmem:[#allocation3 + $0x38] sm:$0xff] }
  0x3e   :  { %2639 = vmatprep.subr.bf16.mxu0 %v2638_v11  ;;  %2669 = vmatprep.subr.bf16.mxu1 %v3177_v1  ;;  %v3326_v22 = vpack.c.bf16 %v108_v19, %v107_v18  ;;  %v95_v26 = vld [vmem:[%s3820_s1 + $0x40] sm:$0xff]  ;;  %v96_v27 = vld [vmem:[%s3820_s1 + $0x48] sm:$0xff]  ;;  %v3339_v29 = vpack.c.bf16 %v110_v25, %v109_v24  ;;  %v97_v33 = vld [vmem:[%s3820_s1 + $0x50] sm:$0xff] }
  0x3f   :  { %v79_v28 = vld [vmem:[%s3819_s0] sm:$0xff]  ;;  %v2650_v30 = vpack.c.bf16 %v96_v27, %v95_v26  ;;  %v112_v32 = vld [vmem:[#allocation3 + $0x48] sm:$0xff]  ;;  %v98_v34 = vld [vmem:[%s3820_s1 + $0x58] sm:$0xff] }
  0x40   :  { %2018 = vmatprep.mubr.f32.mxu0 %v79_v28  ;;  %v111_v31 = vld [vmem:[#allocation3 + $0x40] sm:$0xff]  ;;  %v2654_v36 = vpack.c.bf16 %v98_v34, %v97_v33  ;;  %v113_v37 = vld [vmem:[#allocation3 + $0x50] sm:$0xff]  ;;  %v114_v38 = vld [vmem:[#allocation3 + $0x58] sm:$0xff] }
  0x41   :  { %2641 = vmatpush3.bf16.msra.mxu0 %v2638_v11  ;;  %2671 = vmatpush3.bf16.msra.mxu1 %v3316_v16  ;;  %v3349_v35 = vpack.c.bf16 %v112_v32, %v111_v31  ;;  %v99_v39 = vld [vmem:[%s3820_s1 + $0x60] sm:$0xff]  ;;  %v100_v40 = vld [vmem:[%s3820_s1 + $0x68] sm:$0xff]  ;;  %v3359_v41 = vpack.c.bf16 %v114_v38, %v113_v37  ;;  %v101_v45 = vld [vmem:[%s3820_s1 + $0x70] sm:$0xff] }
  0x42   :  { %2643 = vmatprep.subr.bf16.mxu0 %v2642_v17  ;;  %2672 = vmatprep.subr.bf16.mxu1 %v3177_v1  ;;  %v2658_v42 = vpack.c.bf16 %v100_v40, %v99_v39  ;;  %v115_v43 = vld [vmem:[#allocation3 + $0x60] sm:$0xff]  ;;  %v116_v44 = vld [vmem:[#allocation3 + $0x68] sm:$0xff]  ;;  %v102_v46 = vld [vmem:[%s3820_s1 + $0x78] sm:$0xff] }
  0x43   :  { %v3369_v47 = vpack.c.bf16 %v116_v44, %v115_v43  ;;  %v2662_v48 = vpack.c.bf16 %v102_v46, %v101_v45  ;;  %v117_v49 = vld [vmem:[#allocation3 + $0x70] sm:$0xff]  ;;  %v118_v50 = vld [vmem:[#allocation3 + $0x78] sm:$0xff]  ;;  %v80_v52 = vld [vmem:[%s3819_s0 + $0x8] sm:$0xff] }
  0x44   :  { %v3373_v51 = vpack.c.bf16 %v118_v50, %v117_v49  ;;  %v81_v53 = vld [vmem:[%s3819_s0 + $0x10] sm:$0xff]  ;;  %v82_v54 = vld [vmem:[%s3819_s0 + $0x18] sm:$0xff]  ;;  %v83_v55 = vld [vmem:[%s3819_s0 + $0x20] sm:$0xff] }
  0x45   :  { %2645 = vmatpush3.bf16.msra.mxu0 %v2642_v17  ;;  %2674 = vmatpush3.bf16.msra.mxu1 %v3326_v22  ;;  %v84_v56 = vld [vmem:[%s3819_s0 + $0x28] sm:$0xff]  ;;  %v85_v57 = vld [vmem:[%s3819_s0 + $0x30] sm:$0xff]  ;;  %v86_v58 = vld [vmem:[%s3819_s0 + $0x38] sm:$0xff] }
  0x46   :  { %2647 = vmatprep.subr.bf16.mxu0 %v2646_v23  ;;  %2675 = vmatprep.subr.bf16.mxu1 %v3177_v1  ;;  %v3440_v59 = vld [vmem:[%s3822_s3] ss:$0 sm:$0xff]  ;;  %v812_v43 = vld [vmem:[#allocation5 + $0x28] sm:$0xff]  ;;  %v813_v45 = vld [vmem:[#allocation5 + $0x30] sm:$0xff] }
  0x47   :  { %v810_v37 = vld [vmem:[#allocation5 + $0x18] sm:$0xff]  ;;  %v816_v49 = vld [vmem:[#allocation5 + $0x48] sm:$0xff] }
  0x48   :  { %v814_v46 = vld [vmem:[#allocation5 + $0x38] sm:$0xff] }
  0x49   :  { %2649 = vmatpush3.bf16.msra.mxu0 %v2646_v23  ;;  %2677 = vmatpush3.bf16.msra.mxu1 %v3339_v29 }
  0x4a   :  { %2651 = vmatprep.subr.bf16.mxu0 %v2650_v30  ;;  %2678 = vmatprep.subr.bf16.mxu1 %v3177_v1 }
  0x4d   :  { %2653 = vmatpush3.bf16.msra.mxu0 %v2650_v30  ;;  %2680 = vmatpush3.bf16.msra.mxu1 %v3349_v35 }
  0x4e   :  { %2655 = vmatprep.subr.bf16.mxu0 %v2654_v36  ;;  %2681 = vmatprep.subr.bf16.mxu1 %v3177_v1 }
  0x51   :  { %2657 = vmatpush3.bf16.msra.mxu0 %v2654_v36  ;;  %2683 = vmatpush3.bf16.msra.mxu1 %v3359_v41  ;;  %v809_v36 = vld [vmem:[#allocation5 + $0x10] sm:$0xff] }
  0x52   :  { %2659 = vmatprep.subr.bf16.mxu0 %v2658_v42  ;;  %2684 = vmatprep.subr.bf16.mxu1 %v3177_v1 }
  0x55   :  { %2661 = vmatpush3.bf16.msra.mxu0 %v2658_v42  ;;  %2686 = vmatpush3.bf16.msra.mxu1 %v3369_v47  ;;  %v811_v42 = vld [vmem:[#allocation5 + $0x20] sm:$0xff] }
  0x56   :  { %2663 = vmatprep.subr.bf16.mxu0 %v2662_v48  ;;  %2687 = vmatprep.subr.bf16.mxu1 %v3177_v1  ;;  %v2866_v44 = vpack.c.bf16 %v812_v43, %v811_v42 }
  0x59   :  { %2665 = vmatpush3.bf16.msra.mxu0 %v2662_v48  ;;  %2689 = vmatpush3.bf16.msra.mxu1 %v3373_v51  ;;  %v815_v48 = vld [vmem:[#allocation5 + $0x40] sm:$0xff] }
  0x5a   :  { %2690 = vmatprep.subr.bf16.mxu0 %v3177_v1  ;;  %2714 = vmatprep.subr.bf16.mxu1 %v3177_v1  ;;  %v2874_v50 = vpack.c.bf16 %v816_v49, %v815_v48 }
  0x5c   :  { %2019 = vmatmul.mubr.f32.vlgmr.msra.gmra.mrb[0].mxu0 %v80_v52  ;;  %2063 = vmatmul.mubr.f32.vlgmr.msra.gmra.mrb[0].mxu1 %v3179_v2  ;;  %v818_v52 = vld [vmem:[#allocation5 + $0x58] sm:$0xff] }
  0x5d   :  { %2692 = vmatpush3.bf16.msra.mxu0 %v3307_v10  ;;  %2021 = vmatprep.mubr.f32.mxu0 %v81_v53 }
  0x5e   :  { %2693 = vmatprep.subr.bf16.mxu0 %v3177_v1  ;;  %2716 = vmatpush3.bf16.msra.mxu1 %v3307_v10 }
  0x5f   :  { %2717 = vmatprep.subr.bf16.mxu1 %v3177_v1  ;;  %2132 = vmatprep.mubr.msk.f32.mxu1 %vm3178_vm0, %v3179_v2 }
  0x60   :  { %2022 = vmatmul.mubr.f32.gmra.mrb[2].mxu0 %v82_v54  ;;  %v819_v54 = vld [vmem:[#allocation5 + $0x60] sm:$0xff] }
  0x61   :  { %2695 = vmatpush3.bf16.msra.mxu0 %v3316_v16  ;;  %2024 = vmatprep.mubr.f32.mxu0 %v83_v55  ;;  %v820_v55 = vld [vmem:[#allocation5 + $0x68] sm:$0xff] }
  0x62   :  { %2696 = vmatprep.subr.bf16.mxu0 %v3177_v1  ;;  %2719 = vmatpush3.bf16.msra.mxu1 %v3316_v16 }
  0x63   :  { %2720 = vmatprep.subr.bf16.mxu1 %v3177_v1 }
  0x64   :  { %2025 = vmatmul.mubr.f32.gmra.mrb[4].mxu0 %v84_v56  ;;  %v2882_v56 = vpack.c.bf16 %v820_v55, %v819_v54 }
  0x65   :  { %2698 = vmatpush3.bf16.msra.mxu0 %v3326_v22  ;;  %2027 = vmatprep.mubr.f32.mxu0 %v85_v57  ;;  %v821_v57 = vld [vmem:[#allocation5 + $0x70] sm:$0xff] }
  0x66   :  { %2699 = vmatprep.subr.bf16.mxu0 %v3177_v1  ;;  %2722 = vmatpush3.bf16.msra.mxu1 %v3326_v22 }
  0x67   :  { %2723 = vmatprep.subr.bf16.mxu1 %v3177_v1 }
  0x68   :  { %2028 = vmatmul.mubr.f32.gmra.mrb[6].mxu0 %v86_v58  ;;  %v822_v58 = vld [vmem:[#allocation5 + $0x78] sm:$0xff] }
  0x69   :  { %2701 = vmatpush3.bf16.msra.mxu0 %v3339_v29  ;;  %2097 = vmatprep.mubr.msk.f32.mxu0 %vm3178_vm0, %v3179_v2 }
  0x6a   :  { %2702 = vmatprep.subr.bf16.mxu0 %v3177_v1  ;;  %2725 = vmatpush3.bf16.msra.mxu1 %v3339_v29 }
  0x6b   :  { %2726 = vmatprep.subr.bf16.mxu1 %v3177_v1 }
  0x6d   :  { %2704 = vmatpush3.bf16.msra.mxu0 %v3349_v35 }
  0x6e   :  { %2705 = vmatprep.subr.bf16.mxu0 %v3177_v1  ;;  %2728 = vmatpush3.bf16.msra.mxu1 %v3349_v35 }
  0x6f   :  { %2729 = vmatprep.subr.bf16.mxu1 %v3177_v1 }
  0x71   :  { %2707 = vmatpush3.bf16.msra.mxu0 %v3359_v41 }
  0x72   :  { %2708 = vmatprep.subr.bf16.mxu0 %v3177_v1  ;;  %2731 = vmatpush3.bf16.msra.mxu1 %v3359_v41 }
  0x73   :  { %2732 = vmatprep.subr.bf16.mxu1 %v3177_v1 }
  0x75   :  { %2710 = vmatpush3.bf16.msra.mxu0 %v3369_v47 }
  0x76   :  { %2711 = vmatprep.subr.bf16.mxu0 %v3177_v1  ;;  %2734 = vmatpush3.bf16.msra.mxu1 %v3369_v47 }
  0x77   :  { %2735 = vmatprep.subr.bf16.mxu1 %v3177_v1 }
  0x79   :  { %2713 = vmatpush3.bf16.msra.mxu0 %v3373_v51 }
  0x7a   :  { %2737 = vmatpush3.bf16.msra.mxu1 %v3373_v51  ;;  %2738 = vmatprep.subr.bf16.mxu0 %v3177_v1 }
  0x7b   :  { %2762 = vmatprep.subr.bf16.mxu1 %v3177_v1 }
 0x12f   :  { %v2020_v60 = vpop.f32.mrb[0].mxu0  ;;  %v297_v61 = vpop.f32.mrb[0].mxu1 }
 0x130   :  { %v192_v62 = vpop.f32.mrb[1].mxu0  ;;  %v2064_v63 = vpop.f32.mrb[1].mxu1  ;;  %v198_v12 = vadd.f32 %v2020_v60, %v3440_v59  ;;  %v2886_v60 = vpack.c.bf16 %v822_v58, %v821_v57 }
 0x131   :  { %v193_v0 = vadd.f32 %v3440_v59, %v192_v62  ;;  %v824_v62 = vld [vmem:[#allocation7 + $0x8] sm:$0xff] }
 0x133   :  { %v3443_v3 = vadd.f32 %v297_v61, %v193_v0  ;;  %v3445_v4 = vpop.f32.mrb[2].mxu0  ;;  %v823_v61 = vld [vmem:[#allocation7] sm:$0xff]  ;;  %v825_v0 = vld [vmem:[#allocation7 + $0x10] sm:$0xff] }
 0x134   :  { %v202_v5 = vpop.f32.mrb[3].mxu0  ;;  %v208_v24 = vadd.f32 %v3445_v4, %v3440_v59  ;;  %v3586_v63 = vpack.c.bf16 %v824_v62, %v823_v61 }
 0x135   :  { %v302_v6 = vmax.f32 %v3443_v3, 0.0  ;;  %v203_v18 = vadd.f32 %v3440_v59, %v202_v5  ;;  %v826_v3 = vld [vmem:[#allocation7 + $0x18] sm:$0xff]  ;;  %v827_v5 = vld [vmem:[#allocation7 + $0x20] sm:$0xff] }
 0x136   :  { %v3590_v4 = vpack.c.bf16 %v826_v3, %v825_v0 }
 0x137   :  { %2098 = vmatmul.mubr.f32.vlgmr.msra.gmra.mrb[8].mxu0 %v302_v6  ;;  %v3450_v7 = vpop.f32.mrb[4].mxu0 }
 0x138   :  { %v3452_v8 = vpop.f32.mrb[5].mxu0  ;;  %2740 = vmatpush3.bf16.msra.mxu0 %v3307_v10  ;;  %2167 = vmatprep.mubr.msk.f32.mxu0 %vm3178_vm0, %v3179_v2 }
 0x139   :  { %2741 = vmatprep.subr.bf16.mxu0 %v3177_v1  ;;  %v213_v30 = vadd.f32 %v3440_v59, %v3452_v8  ;;  %v829_v8 = vld [vmem:[#allocation7 + $0x30] sm:$0xff] }
 0x13b   :  { %v3472_v9 = vpop.f32.mrb[6].mxu0 }
 0x13c   :  { %2743 = vmatpush3.bf16.msra.mxu0 %v3316_v16  ;;  %v3474_v11 = vpop.f32.mrb[7].mxu0 }
 0x13d   :  { %2744 = vmatprep.subr.bf16.mxu0 %v3177_v1 }
 0x140   :  { %2746 = vmatpush3.bf16.msra.mxu0 %v3326_v22 }
 0x141   :  { %2747 = vmatprep.subr.bf16.mxu0 %v3177_v1 }
 0x144   :  { %2749 = vmatpush3.bf16.msra.mxu0 %v3339_v29 }
 0x145   :  { %2750 = vmatprep.subr.bf16.mxu0 %v3177_v1 }
 0x148   :  { %2752 = vmatpush3.bf16.msra.mxu0 %v3349_v35 }
 0x149   :  { %2753 = vmatprep.subr.bf16.mxu0 %v3177_v1 }
 0x14c   :  { %2755 = vmatpush3.bf16.msra.mxu0 %v3359_v41 }
 0x14d   :  { %2756 = vmatprep.subr.bf16.mxu0 %v3177_v1 }
 0x150   :  { %2758 = vmatpush3.bf16.msra.mxu0 %v3369_v47 }
 0x151   :  { %2759 = vmatprep.subr.bf16.mxu0 %v3177_v1 }
 0x154   :  { %2761 = vmatpush3.bf16.msra.mxu0 %v3373_v51 }
 0x155   :  { %2786 = vmatprep.subr.bf16.mxu0 %v3177_v1 }
 0x20a   :  { %v369_v13 = vpop.f32.mrb[8].mxu0 }
 0x20b   :  { %v3477_v14 = vadd.f32 %v369_v13, %v198_v12  ;;  %v2099_v15 = vpop.f32.mrb[9].mxu0  ;;  %v830_v12 = vld [vmem:[#allocation7 + $0x38] sm:$0xff] }
 0x20c   :  { %v3598_v13 = vpack.c.bf16 %v830_v12, %v829_v8  ;;  %v832_v15 = vld [vmem:[#allocation7 + $0x48] sm:$0xff] }
 0x20d   :  { %v374_v17 = vmax.f32 %v3477_v14, 0.0  ;;  %v831_v14 = vld [vmem:[#allocation7 + $0x40] sm:$0xff] }
 0x20f   :  { %2133 = vmatmul.mubr.f32.vlgmr.msra.gmra.mrb[2].mxu1 %v374_v17 }
 0x210   :  { %2764 = vmatpush3.bf16.msra.mxu1 %v3307_v10  ;;  %2202 = vmatprep.mubr.msk.f32.mxu1 %vm3178_vm0, %v3179_v2 }
 0x211   :  { %2765 = vmatprep.subr.bf16.mxu1 %v3177_v1 }
 0x214   :  { %2767 = vmatpush3.bf16.msra.mxu1 %v3316_v16 }
 0x215   :  { %2768 = vmatprep.subr.bf16.mxu1 %v3177_v1 }
 0x218   :  { %2770 = vmatpush3.bf16.msra.mxu1 %v3326_v22 }
 0x219   :  { %2771 = vmatprep.subr.bf16.mxu1 %v3177_v1 }
 0x21c   :  { %2773 = vmatpush3.bf16.msra.mxu1 %v3339_v29 }
 0x21d   :  { %2774 = vmatprep.subr.bf16.mxu1 %v3177_v1 }
 0x220   :  { %2776 = vmatpush3.bf16.msra.mxu1 %v3349_v35 }
 0x221   :  { %2777 = vmatprep.subr.bf16.mxu1 %v3177_v1 }
 0x224   :  { %2779 = vmatpush3.bf16.msra.mxu1 %v3359_v41 }
 0x225   :  { %2780 = vmatprep.subr.bf16.mxu1 %v3177_v1 }
 0x228   :  { %2782 = vmatpush3.bf16.msra.mxu1 %v3369_v47 }
 0x229   :  { %2783 = vmatprep.subr.bf16.mxu1 %v3177_v1 }
 0x22c   :  { %2785 = vmatpush3.bf16.msra.mxu1 %v3373_v51 }
 0x22d   :  { %2810 = vmatprep.subr.bf16.mxu1 %v3177_v1 }
 0x2e2   :  { %v441_v19 = vpop.f32.mrb[2].mxu1 }
 0x2e3   :  { %v3501_v20 = vadd.f32 %v441_v19, %v203_v18  ;;  %v2134_v21 = vpop.f32.mrb[3].mxu1  ;;  %v833_v18 = vld [vmem:[#allocation7 + $0x50] sm:$0xff]  ;;  %v834_v19 = vld [vmem:[#allocation7 + $0x58] sm:$0xff] }
 0x2e4   :  { %v835_v21 = vld [vmem:[#allocation7 + $0x60] sm:$0xff] }
 0x2e5   :  { %v446_v23 = vmax.f32 %v3501_v20, 0.0  ;;  %v3606_v20 = vpack.c.bf16 %v834_v19, %v833_v18 }
 0x2e7   :  { %2168 = vmatmul.mubr.f32.vlgmr.msra.gmra.mrb[10].mxu0 %v446_v23 }
 0x2e8   :  { %2788 = vmatpush3.bf16.msra.mxu0 %v3307_v10  ;;  %2237 = vmatprep.mubr.msk.f32.mxu0 %vm3178_vm0, %v3179_v2 }
 0x2e9   :  { %2789 = vmatprep.subr.bf16.mxu0 %v3177_v1 }
 0x2ec   :  { %2791 = vmatpush3.bf16.msra.mxu0 %v3316_v16 }
 0x2ed   :  { %2792 = vmatprep.subr.bf16.mxu0 %v3177_v1 }
 0x2f0   :  { %2794 = vmatpush3.bf16.msra.mxu0 %v3326_v22 }
 0x2f1   :  { %2795 = vmatprep.subr.bf16.mxu0 %v3177_v1 }
 0x2f4   :  { %2797 = vmatpush3.bf16.msra.mxu0 %v3339_v29 }
 0x2f5   :  { %2798 = vmatprep.subr.bf16.mxu0 %v3177_v1 }
 0x2f8   :  { %2800 = vmatpush3.bf16.msra.mxu0 %v3349_v35 }
 0x2f9   :  { %2801 = vmatprep.subr.bf16.mxu0 %v3177_v1 }
 0x2fc   :  { %2803 = vmatpush3.bf16.msra.mxu0 %v3359_v41 }
 0x2fd   :  { %2804 = vmatprep.subr.bf16.mxu0 %v3177_v1 }
 0x300   :  { %2806 = vmatpush3.bf16.msra.mxu0 %v3369_v47 }
 0x301   :  { %2807 = vmatprep.subr.bf16.mxu0 %v3177_v1 }
 0x304   :  { %2809 = vmatpush3.bf16.msra.mxu0 %v3373_v51 }
 0x305   :  { %2834 = vmatprep.subr.bf16.mxu0 %v3177_v1 }
 0x3ba   :  { %v513_v25 = vpop.f32.mrb[10].mxu0 }
 0x3bb   :  { %v3526_v26 = vadd.f32 %v513_v25, %v208_v24  ;;  %v2169_v27 = vpop.f32.mrb[11].mxu0  ;;  %v837_v25 = vld [vmem:[#allocation7 + $0x70] sm:$0xff] }
 0x3bd   :  { %v518_v28 = vmax.f32 %v3526_v26, 0.0  ;;  %v838_v26 = vld [vmem:[#allocation7 + $0x78] sm:$0xff] }
 0x3be   :  { %v3614_v27 = vpack.c.bf16 %v838_v26, %v837_v25 }
 0x3bf   :  { %2203 = vmatmul.mubr.f32.vlgmr.msra.gmra.mrb[4].mxu1 %v518_v28 }
 0x3c0   :  { %2812 = vmatpush3.bf16.msra.mxu1 %v3307_v10  ;;  %2272 = vmatprep.mubr.msk.f32.mxu1 %vm3178_vm0, %v3179_v2 }
 0x3c1   :  { %2813 = vmatprep.subr.bf16.mxu1 %v3177_v1 }
 0x3c4   :  { %2815 = vmatpush3.bf16.msra.mxu1 %v3316_v16 }
 0x3c5   :  { %2816 = vmatprep.subr.bf16.mxu1 %v3177_v1 }
 0x3c8   :  { %2818 = vmatpush3.bf16.msra.mxu1 %v3326_v22 }
 0x3c9   :  { %2819 = vmatprep.subr.bf16.mxu1 %v3177_v1 }
 0x3cc   :  { %2821 = vmatpush3.bf16.msra.mxu1 %v3339_v29 }
 0x3cd   :  { %2822 = vmatprep.subr.bf16.mxu1 %v3177_v1 }
 0x3d0   :  { %2824 = vmatpush3.bf16.msra.mxu1 %v3349_v35 }
 0x3d1   :  { %2825 = vmatprep.subr.bf16.mxu1 %v3177_v1 }
 0x3d4   :  { %2827 = vmatpush3.bf16.msra.mxu1 %v3359_v41 }
 0x3d5   :  { %2828 = vmatprep.subr.bf16.mxu1 %v3177_v1 }
 0x3d8   :  { %2830 = vmatpush3.bf16.msra.mxu1 %v3369_v47 }
 0x3d9   :  { %2831 = vmatprep.subr.bf16.mxu1 %v3177_v1 }
 0x3dc   :  { %2833 = vmatpush3.bf16.msra.mxu1 %v3373_v51 }
 0x492   :  { %v585_v31 = vpop.f32.mrb[4].mxu1 }
 0x493   :  { %v3550_v32 = vadd.f32 %v585_v31, %v213_v30  ;;  %v2204_v33 = vpop.f32.mrb[5].mxu1 }
 0x495   :  { %v590_v34 = vmax.f32 %v3550_v32, 0.0 }
 0x497   :  { %2238 = vmatmul.mubr.f32.vlgmr.msra.gmra.mrb[12].mxu0 %v590_v34 }
 0x498   :  { %2836 = vmatpush3.bf16.msra.mxu0 %v3307_v10  ;;  %2307 = vmatprep.mubr.msk.f32.mxu0 %vm3178_vm0, %v3179_v2  ;;  %v807_v10 = vld [vmem:[#allocation5] sm:$0xff] }
 0x499   :  { %2837 = vmatprep.subr.bf16.mxu0 %v3177_v1 }
 0x49c   :  { %2839 = vmatpush3.bf16.msra.mxu0 %v3316_v16  ;;  %v808_v16 = vld [vmem:[#allocation5 + $0x8] sm:$0xff] }
 0x49d   :  { %2840 = vmatprep.subr.bf16.mxu0 %v3177_v1 }
 0x4a0   :  { %2842 = vmatpush3.bf16.msra.mxu0 %v3326_v22  ;;  %v2858_v22 = vpack.c.bf16 %v808_v16, %v807_v10 }
 0x4a1   :  { %2843 = vmatprep.subr.bf16.mxu0 %v3177_v1 }
 0x4a2   :  { %2859 = vmatprep.subr.bf16.mxu1 %v2858_v22 }
 0x4a4   :  { %2845 = vmatpush3.bf16.msra.mxu0 %v3339_v29  ;;  %v218_v29 = vadd.f32 %v3450_v7, %v3440_v59 }
 0x4a5   :  { %2846 = vmatprep.subr.bf16.mxu0 %v3177_v1 }
 0x4a8   :  { %2848 = vmatpush3.bf16.msra.mxu0 %v3349_v35 }
 0x4a9   :  { %2849 = vmatprep.subr.bf16.mxu0 %v3177_v1 }
 0x4ac   :  { %2851 = vmatpush3.bf16.msra.mxu0 %v3359_v41  ;;  %v2862_v41 = vpack.c.bf16 %v810_v37, %v809_v36 }
 0x4ad   :  { %2852 = vmatprep.subr.bf16.mxu0 %v3177_v1 }
 0x4b0   :  { %2854 = vmatpush3.bf16.msra.mxu0 %v3369_v47  ;;  %v2870_v47 = vpack.c.bf16 %v814_v46, %v813_v45  ;;  %v1023_v46 = vlaneseq }
 0x4b1   :  { %2855 = vmatprep.subr.bf16.mxu0 %v3177_v1 }
 0x4b4   :  { %2857 = vmatpush3.bf16.msra.mxu0 %v3373_v51  ;;  %v817_v51 = vld [vmem:[#allocation5 + $0x50] sm:$0xff] }
 0x4b5   :  { %2890 = vmatprep.subr.bf16.mxu0 %v3177_v1  ;;  %v2878_v53 = vpack.c.bf16 %v818_v52, %v817_v51 }
 0x56a   :  { %v657_v35 = vpop.f32.mrb[12].mxu0 }
 0x56b   :  { %v661_v38 = vadd.f32 %v657_v35, %v218_v29  ;;  %v2239_v39 = vpop.f32.mrb[13].mxu0  ;;  %v228_v35 = vadd.f32 %v3472_v9, %v3440_v59 }
 0x56d   :  { %v662_v40 = vmax.f32 %v661_v38, 0.0 }
 0x56f   :  { %2273 = vmatmul.mubr.f32.vlgmr.msra.gmra.mrb[6].mxu1 %v662_v40 }
 0x570   :  { %2861 = vmatpush3.bf16.msra.mxu1 %v2858_v22  ;;  %2342 = vmatprep.mubr.f32.mxu1 %v302_v6  ;;  %v828_v6 = vld [vmem:[#allocation7 + $0x28] sm:$0xff] }
 0x571   :  { %2863 = vmatprep.subr.bf16.mxu1 %v2862_v41  ;;  %v3594_v7 = vpack.c.bf16 %v828_v6, %v827_v5 }
 0x574   :  { %2865 = vmatpush3.bf16.msra.mxu1 %v2862_v41 }
 0x575   :  { %2867 = vmatprep.subr.bf16.mxu1 %v2866_v44 }
 0x578   :  { %2869 = vmatpush3.bf16.msra.mxu1 %v2866_v44 }
 0x579   :  { %2871 = vmatprep.subr.bf16.mxu1 %v2870_v47 }
 0x57c   :  { %2873 = vmatpush3.bf16.msra.mxu1 %v2870_v47  ;;  %v3700_v47 = vshrl.u32 %v1023_v46, 7 }
 0x57d   :  { %2875 = vmatprep.subr.bf16.mxu1 %v2874_v50 }
 0x57e   :  { %v1025_v48 = vsub.s32 0, %v3700_v47  ;;  %v1103_v49 = vsub.s32 1, %v3700_v47  ;;  %v1181_v62 = vsub.s32 2, %v3700_v47  ;;  %v1259_v18 = vsub.s32 3, %v3700_v47 }
 0x57f   :  { %vm1588_vm1 = vcmp.lt.s32.totalorder %v3700_v47, 2 }
 0x580   :  { %2877 = vmatpush3.bf16.msra.mxu1 %v2874_v50  ;;  %v3707_v50 = vld [vmem:[%s3826_s7] sm:$0xff] }
 0x581   :  { %2879 = vmatprep.subr.bf16.mxu1 %v2878_v53  ;;  %v1104_v55 = vrot.slane %v3707_v50, %v1103_v49  ;;  %v1182_v6 = vrot.slane %v3707_v50, %v1181_v62  ;;  %v1260_v25 = vrot.slane %v3707_v50, %v1259_v18 }
 0x584   :  { %2881 = vmatpush3.bf16.msra.mxu1 %v2878_v53  ;;  %v1026_v53 = vrot.slane %v3707_v50, %v1025_v48  ;;  %v1571_v48 = vsub.s32 7, %v3700_v47 }
 0x585   :  { %2883 = vmatprep.subr.bf16.mxu1 %v2882_v56 }
 0x588   :  { %2885 = vmatpush3.bf16.msra.mxu1 %v2882_v56 }
 0x589   :  { %2887 = vmatprep.subr.bf16.mxu1 %v2886_v60 }
 0x58c   :  { %2889 = vmatpush3.bf16.msra.mxu1 %v2886_v60 }
 0x58d   :  { %2914 = vmatprep.subr.bf16.mxu1 %v3177_v1 }
 0x58f   :  { %2343 = vmatmul.mubr.f32.vlgmr.msra.gmra.mrb[8].mxu1 %v374_v17  ;;  %v3602_v17 = vpack.c.bf16 %v832_v15, %v831_v14 }
 0x590   :  { %2345 = vmatprep.mubr.f32.mxu1 %v446_v23  ;;  %2916 = vmatpush3.bf16.msra.mxu1 %v3586_v63  ;;  %v836_v23 = vld [vmem:[#allocation7 + $0x68] sm:$0xff] }
 0x591   :  { %2917 = vmatprep.subr.bf16.mxu1 %v3177_v1  ;;  %v3610_v24 = vpack.c.bf16 %v836_v23, %v835_v21 }
 0x593   :  { %2346 = vmatmul.mubr.f32.gmra.mrb[10].mxu1 %v518_v28  ;;  %v223_v28 = vadd.f32 %v3440_v59, %v3474_v11 }
 0x594   :  { %2348 = vmatprep.mubr.f32.mxu1 %v590_v34  ;;  %2919 = vmatpush3.bf16.msra.mxu1 %v3590_v4 }
 0x595   :  { %2920 = vmatprep.subr.bf16.mxu1 %v3177_v1 }
 0x597   :  { %2349 = vmatmul.mubr.f32.gmra.mrb[12].mxu1 %v662_v40  ;;  %v3674_v40 = vld [vmem:[%s3825_s6] ss:$0 sm:$0xff] }
 0x598   :  { %2922 = vmatpush3.bf16.msra.mxu1 %v3594_v7 }
 0x599   :  { %2923 = vmatprep.subr.bf16.mxu1 %v3177_v1 }
 0x59c   :  { %2925 = vmatpush3.bf16.msra.mxu1 %v3598_v13 }
 0x59d   :  { %2926 = vmatprep.subr.bf16.mxu1 %v3177_v1 }
 0x5a0   :  { %2928 = vmatpush3.bf16.msra.mxu1 %v3602_v17 }
 0x5a1   :  { %2929 = vmatprep.subr.bf16.mxu1 %v3177_v1 }
 0x5a4   :  { %2931 = vmatpush3.bf16.msra.mxu1 %v3606_v20 }
 0x5a5   :  { %2932 = vmatprep.subr.bf16.mxu1 %v3177_v1 }
 0x5a8   :  { %2934 = vmatpush3.bf16.msra.mxu1 %v3610_v24 }
 0x5a9   :  { %2935 = vmatprep.subr.bf16.mxu1 %v3177_v1 }
 0x5ac   :  { %2937 = vmatpush3.bf16.msra.mxu1 %v3614_v27 }
 0x5ad   :  { %2962 = vmatprep.subr.bf16.mxu1 %v3177_v1 }
 0x642   :  { %v729_v30 = vpop.f32.mrb[6].mxu1 }
 0x643   :  { %v733_v31 = vadd.f32 %v729_v30, %v223_v28  ;;  %v2274_v32 = vpop.f32.mrb[7].mxu1 }
 0x644   :  { %v1337_v32 = vsub.s32 4, %v3700_v47 }
 0x645   :  { %v734_v33 = vmax.f32 %v733_v31, 0.0 }
 0x647   :  { %2308 = vmatmul.mubr.f32.vlgmr.msra.gmra.mrb[14].mxu0 %v734_v33  ;;  %2351 = vmatprep.mubr.f32.mxu1 %v734_v33 }
 0x648   :  { %2892 = vmatpush3.bf16.msra.mxu0 %v3586_v63  ;;  %2386 = vmatprep.mubr.msk.f32.mxu0 %vm3178_vm0, %v3179_v2 }
 0x649   :  { %2893 = vmatprep.subr.bf16.mxu0 %v3177_v1 }
 0x64c   :  { %2895 = vmatpush3.bf16.msra.mxu0 %v3590_v4 }
 0x64d   :  { %2896 = vmatprep.subr.bf16.mxu0 %v3177_v1 }
 0x650   :  { %2898 = vmatpush3.bf16.msra.mxu0 %v3594_v7 }
 0x651   :  { %2899 = vmatprep.subr.bf16.mxu0 %v3177_v1 }
 0x654   :  { %2901 = vmatpush3.bf16.msra.mxu0 %v3598_v13 }
 0x655   :  { %2902 = vmatprep.subr.bf16.mxu0 %v3177_v1 }
 0x658   :  { %2904 = vmatpush3.bf16.msra.mxu0 %v3602_v17 }
 0x659   :  { %2905 = vmatprep.subr.bf16.mxu0 %v3177_v1 }
 0x65c   :  { %2907 = vmatpush3.bf16.msra.mxu0 %v3606_v20 }
 0x65d   :  { %2908 = vmatprep.subr.bf16.mxu0 %v3177_v1 }
 0x660   :  { %2910 = vmatpush3.bf16.msra.mxu0 %v3610_v24 }
 0x661   :  { %2911 = vmatprep.subr.bf16.mxu0 %v3177_v1 }
 0x662   :  { %v3636_v11 = vpop.f32.mrb[8].mxu1 }
 0x663   :  { %v912_v34 = vpop.f32.mrb[9].mxu1  ;;  %v918_v51 = vadd.f32 %v3636_v11, %v3674_v40 }
 0x664   :  { %2913 = vmatpush3.bf16.msra.mxu0 %v3614_v27  ;;  %v913_v41 = vadd.f32 %v3674_v40, %v912_v34 }
 0x665   :  { %2938 = vmatprep.subr.bf16.mxu0 %v3177_v1 }
 0x666   :  { %v3640_v10 = vpop.f32.mrb[10].mxu1 }
 0x667   :  { %v3642_v16 = vpop.f32.mrb[11].mxu1  ;;  %2387 = vmatmul.mubr.f32.vlgmr.msra.gmra.mrb[16].mxu0 %v3179_v2  ;;  %v928_v19 = vadd.f32 %v3640_v10, %v3674_v40  ;;  %v1338_v10 = vrot.slane %v3707_v50, %v1337_v32 }
 0x668   :  { %2940 = vmatpush3.bf16.msra.mxu0 %v3586_v63  ;;  %2456 = vmatprep.mubr.msk.f32.mxu0 %vm3178_vm0, %v3179_v2  ;;  %v923_v0 = vadd.f32 %v3674_v40, %v3642_v16 }
 0x669   :  { %2941 = vmatprep.subr.bf16.mxu0 %v3177_v1 }
 0x66a   :  { %v3649_v22 = vpop.f32.mrb[12].mxu1 }
 0x66b   :  { %v3651_v29 = vpop.f32.mrb[13].mxu1 }
 0x66c   :  { %2943 = vmatpush3.bf16.msra.mxu0 %v3590_v4  ;;  %v933_v33 = vadd.f32 %v3674_v40, %v3651_v29 }
 0x66d   :  { %2944 = vmatprep.subr.bf16.mxu0 %v3177_v1 }
 0x670   :  { %2946 = vmatpush3.bf16.msra.mxu0 %v3594_v7 }
 0x671   :  { %2947 = vmatprep.subr.bf16.mxu0 %v3177_v1 }
 0x674   :  { %2949 = vmatpush3.bf16.msra.mxu0 %v3598_v13 }
 0x675   :  { %2950 = vmatprep.subr.bf16.mxu0 %v3177_v1 }
 0x678   :  { %2952 = vmatpush3.bf16.msra.mxu0 %v3602_v17 }
 0x679   :  { %2953 = vmatprep.subr.bf16.mxu0 %v3177_v1 }
 0x67c   :  { %2955 = vmatpush3.bf16.msra.mxu0 %v3606_v20 }
 0x67d   :  { %2956 = vmatprep.subr.bf16.mxu0 %v3177_v1 }
 0x680   :  { %2958 = vmatpush3.bf16.msra.mxu0 %v3610_v24 }
 0x681   :  { %2959 = vmatprep.subr.bf16.mxu0 %v3177_v1 }
 0x684   :  { %2961 = vmatpush3.bf16.msra.mxu0 %v3614_v27 }
 0x685   :  { %2986 = vmatprep.subr.bf16.mxu0 %v3177_v1 }
 0x71a   :  { %v801_v36 = vpop.f32.mrb[14].mxu0 }
 0x71b   :  { %v805_v37 = vadd.f32 %v801_v36, %v228_v35  ;;  %v2309_v38 = vpop.f32.mrb[15].mxu0 }
 0x71d   :  { %v806_v39 = vmax.f32 %v805_v37, 0.0 }
 0x71f   :  { %2352 = vmatmul.mubr.f32.gmra.mrb[14].mxu1 %v806_v39 }
 0x720   :  { %2421 = vmatprep.mubr.msk.f32.mxu1 %vm3178_vm0, %v3179_v2 }
 0x73a   :  { %v1017_v42 = vpop.f32.mrb[16].mxu0 }
 0x73b   :  { %v1021_v43 = vadd.f32 %v1017_v42, %v913_v41  ;;  %v2388_v44 = vpop.f32.mrb[17].mxu0 }
 0x73d   :  { %v1022_v45 = vmax.f32 %v1021_v43, 0.0 }
 0x73f   :  { %2422 = vmatmul.mubr.f32.vlgmr.msra.gmra.mrb[16].mxu1 %v1022_v45  ;;  %v1027_v58 = vmul.f32 %v1026_v53, %v1022_v45 }
 0x740   :  { %2964 = vmatpush3.bf16.msra.mxu1 %v3586_v63  ;;  %2491 = vmatprep.mubr.msk.f32.mxu1 %vm3178_vm0, %v3179_v2 }
 0x741   :  { %2965 = vmatprep.subr.bf16.mxu1 %v3177_v1 }
 0x744   :  { %2967 = vmatpush3.bf16.msra.mxu1 %v3590_v4 }
 0x745   :  { %2968 = vmatprep.subr.bf16.mxu1 %v3177_v1 }
 0x748   :  { %2970 = vmatpush3.bf16.msra.mxu1 %v3594_v7 }
 0x749   :  { %2971 = vmatprep.subr.bf16.mxu1 %v3177_v1 }
 0x74c   :  { %2973 = vmatpush3.bf16.msra.mxu1 %v3598_v13 }
 0x74d   :  { %2974 = vmatprep.subr.bf16.mxu1 %v3177_v1 }
 0x750   :  { %2976 = vmatpush3.bf16.msra.mxu1 %v3602_v17 }
 0x751   :  { %2977 = vmatprep.subr.bf16.mxu1 %v3177_v1 }
 0x754   :  { %2979 = vmatpush3.bf16.msra.mxu1 %v3606_v20 }
 0x755   :  { %2980 = vmatprep.subr.bf16.mxu1 %v3177_v1 }
 0x758   :  { %2982 = vmatpush3.bf16.msra.mxu1 %v3610_v24 }
 0x759   :  { %2983 = vmatprep.subr.bf16.mxu1 %v3177_v1 }
 0x75c   :  { %2985 = vmatpush3.bf16.msra.mxu1 %v3614_v27 }
 0x75d   :  { %3010 = vmatprep.subr.bf16.mxu1 %v3177_v1 }
 0x7f2   :  { %v3695_v59 = vpop.f32.mrb[14].mxu1 }
 0x7f3   :  { %v3697_v9 = vpop.f32.mrb[15].mxu1  ;;  %v948_v49 = vadd.f32 %v3695_v59, %v3674_v40  ;;  %v1664_v59 = vsel %vm1588_vm1, 1.0, %v3179_v2 }
 0x812   :  { %v1095_v52 = vpop.f32.mrb[16].mxu1 }
 0x813   :  { %v1099_v54 = vadd.f32 %v1095_v52, %v918_v51  ;;  %v2423_v56 = vpop.f32.mrb[17].mxu1 }
 0x815   :  { %v1100_v57 = vmax.f32 %v1099_v54, 0.0  ;;  %v1572_v54 = vrot.slane %v3707_v50, %v1571_v48 }
 0x817   :  { %v1105_v60 = vmul.f32 %v1104_v55, %v1100_v57  ;;  %2457 = vmatmul.mubr.f32.vlgmr.msra.gmra.mrb[18].mxu0 %v1100_v57  ;;  %v3180_v57 = vmov 0  }
 0x818   :  { %2988 = vmatpush3.bf16.msra.mxu0 %v3586_v63  ;;  %2526 = vmatprep.mubr.msk.f32.mxu0 %vm3178_vm0, %v3179_v2 }
 0x819   :  { %v1106_v61 = vadd.f32 %v1105_v60, %v1027_v58  ;;  %2989 = vmatprep.subr.bf16.mxu0 %v3177_v1  ;;  %3096 = vset.pattern.permute.xlu1 %v3180_v57  ;;  %v1663_v58 = vld [vmem:[#allocation2] ss:$0 sm:$0xff] }
 0x81a   :  { %3097 = vset.pattern.permute.xlu0 %v3180_v57  ;;  %v1585_v60 = vld [vmem:[%s3828_s9] sm:$0xff] }
 0x81b   :  { %vm1622_vm2 = vcmp.gt.f32.partialorder %v1585_v60, 0.5 }
 0x81c   :  { %2991 = vmatpush3.bf16.msra.mxu0 %v3590_v4 }
 0x81d   :  { %2992 = vmatprep.subr.bf16.mxu0 %v3177_v1 }
 0x820   :  { %2994 = vmatpush3.bf16.msra.mxu0 %v3594_v7 }
 0x821   :  { %2995 = vmatprep.subr.bf16.mxu0 %v3177_v1 }
 0x824   :  { %2997 = vmatpush3.bf16.msra.mxu0 %v3598_v13 }
 0x825   :  { %2998 = vmatprep.subr.bf16.mxu0 %v3177_v1 }
 0x828   :  { %3000 = vmatpush3.bf16.msra.mxu0 %v3602_v17 }
 0x829   :  { %3001 = vmatprep.subr.bf16.mxu0 %v3177_v1 }
 0x82c   :  { %3003 = vmatpush3.bf16.msra.mxu0 %v3606_v20 }
 0x82d   :  { %3004 = vmatprep.subr.bf16.mxu0 %v3177_v1 }
 0x830   :  { %3006 = vmatpush3.bf16.msra.mxu0 %v3610_v24 }
 0x831   :  { %3007 = vmatprep.subr.bf16.mxu0 %v3177_v1 }
 0x834   :  { %3009 = vmatpush3.bf16.msra.mxu0 %v3614_v27 }
 0x835   :  { %3034 = vmatprep.subr.bf16.mxu0 %v3177_v1 }
 0x8ea   :  { %v1173_v3 = vpop.f32.mrb[18].mxu0 }
 0x8eb   :  { %v1177_v5 = vadd.f32 %v1173_v3, %v923_v0  ;;  %v2458_v8 = vpop.f32.mrb[19].mxu0 }
 0x8ed   :  { %v1178_v12 = vmax.f32 %v1177_v5, 0.0 }
 0x8ef   :  { %v1183_v14 = vmul.f32 %v1182_v6, %v1178_v12  ;;  %2492 = vmatmul.mubr.f32.vlgmr.msra.gmra.mrb[18].mxu1 %v1178_v12 }
 0x8f0   :  { %3012 = vmatpush3.bf16.msra.mxu1 %v3586_v63  ;;  %2561 = vmatprep.mubr.msk.f32.mxu1 %vm3178_vm0, %v3179_v2 }
 0x8f1   :  { %v1184_v15 = vadd.f32 %v1183_v14, %v1106_v61  ;;  %3013 = vmatprep.subr.bf16.mxu1 %v3177_v1 }
 0x8f4   :  { %3015 = vmatpush3.bf16.msra.mxu1 %v3590_v4 }
 0x8f5   :  { %3016 = vmatprep.subr.bf16.mxu1 %v3177_v1 }
 0x8f8   :  { %3018 = vmatpush3.bf16.msra.mxu1 %v3594_v7 }
 0x8f9   :  { %3019 = vmatprep.subr.bf16.mxu1 %v3177_v1 }
 0x8fc   :  { %3021 = vmatpush3.bf16.msra.mxu1 %v3598_v13 }
 0x8fd   :  { %3022 = vmatprep.subr.bf16.mxu1 %v3177_v1 }
 0x900   :  { %3024 = vmatpush3.bf16.msra.mxu1 %v3602_v17 }
 0x901   :  { %3025 = vmatprep.subr.bf16.mxu1 %v3177_v1 }
 0x904   :  { %3027 = vmatpush3.bf16.msra.mxu1 %v3606_v20 }
 0x905   :  { %3028 = vmatprep.subr.bf16.mxu1 %v3177_v1 }
 0x908   :  { %3030 = vmatpush3.bf16.msra.mxu1 %v3610_v24 }
 0x909   :  { %3031 = vmatprep.subr.bf16.mxu1 %v3177_v1 }
 0x90c   :  { %3033 = vmatpush3.bf16.msra.mxu1 %v3614_v27 }
 0x90d   :  { %3058 = vmatprep.subr.bf16.mxu1 %v3177_v1 }
 0x9c2   :  { %v1251_v21 = vpop.f32.mrb[18].mxu1 }
 0x9c3   :  { %v1255_v23 = vadd.f32 %v1251_v21, %v928_v19  ;;  %v2493_v26 = vpop.f32.mrb[19].mxu1 }
 0x9c5   :  { %v1256_v28 = vmax.f32 %v1255_v23, 0.0 }
 0x9c7   :  { %v1261_v30 = vmul.f32 %v1260_v25, %v1256_v28  ;;  %2527 = vmatmul.mubr.f32.vlgmr.msra.gmra.mrb[20].mxu0 %v1256_v28 }
 0x9c8   :  { %3036 = vmatpush3.bf16.msra.mxu0 %v3586_v63  ;;  %2596 = vmatprep.mubr.msk.f32.mxu0 %vm3178_vm0, %v3179_v2 }
 0x9c9   :  { %v1262_v31 = vadd.f32 %v1261_v30, %v1184_v15  ;;  %3037 = vmatprep.subr.bf16.mxu0 %v3177_v1 }
 0x9cc   :  { %3039 = vmatpush3.bf16.msra.mxu0 %v3590_v4 }
 0x9cd   :  { %3040 = vmatprep.subr.bf16.mxu0 %v3177_v1 }
 0x9d0   :  { %3042 = vmatpush3.bf16.msra.mxu0 %v3594_v7 }
 0x9d1   :  { %3043 = vmatprep.subr.bf16.mxu0 %v3177_v1 }
 0x9d4   :  { %3045 = vmatpush3.bf16.msra.mxu0 %v3598_v13 }
 0x9d5   :  { %3046 = vmatprep.subr.bf16.mxu0 %v3177_v1 }
 0x9d8   :  { %3048 = vmatpush3.bf16.msra.mxu0 %v3602_v17 }
 0x9d9   :  { %3049 = vmatprep.subr.bf16.mxu0 %v3177_v1 }
 0x9dc   :  { %3051 = vmatpush3.bf16.msra.mxu0 %v3606_v20 }
 0x9dd   :  { %3052 = vmatprep.subr.bf16.mxu0 %v3177_v1 }
 0x9e0   :  { %3054 = vmatpush3.bf16.msra.mxu0 %v3610_v24 }
 0x9e1   :  { %3055 = vmatprep.subr.bf16.mxu0 %v3177_v1 }
 0x9e4   :  { %3057 = vmatpush3.bf16.msra.mxu0 %v3614_v27 }
 0xa9a   :  { %v1329_v11 = vpop.f32.mrb[20].mxu0 }
 0xa9b   :  { %v1333_v34 = vadd.f32 %v1329_v11, %v933_v33  ;;  %v2528_v16 = vpop.f32.mrb[21].mxu0 }
 0xa9d   :  { %v1334_v35 = vmax.f32 %v1333_v34, 0.0 }
 0xa9f   :  { %v1339_v36 = vmul.f32 %v1338_v10, %v1334_v35  ;;  %2562 = vmatmul.mubr.f32.vlgmr.msra.gmra.mrb[20].mxu1 %v1334_v35 }
 0xaa0   :  { %3060 = vmatpush3.bf16.msra.mxu1 %v3586_v63  ;;  %2631 = vmatprep.mubr.msk.f32.mxu1 %vm3178_vm0, %v3179_v2  ;;  %v1415_v63 = vsub.s32 5, %v3700_v47 }
 0xaa1   :  { %v1340_v37 = vadd.f32 %v1339_v36, %v1262_v31  ;;  %3061 = vmatprep.subr.bf16.mxu1 %v3177_v1 }
 0xaa4   :  { %3063 = vmatpush3.bf16.msra.mxu1 %v3590_v4  ;;  %v938_v4 = vadd.f32 %v3649_v22, %v3674_v40 }
 0xaa5   :  { %3064 = vmatprep.subr.bf16.mxu1 %v3177_v1 }
 0xaa8   :  { %3066 = vmatpush3.bf16.msra.mxu1 %v3594_v7 }
 0xaa9   :  { %3067 = vmatprep.subr.bf16.mxu1 %v3177_v1 }
 0xaac   :  { %3069 = vmatpush3.bf16.msra.mxu1 %v3598_v13 }
 0xaad   :  { %3070 = vmatprep.subr.bf16.mxu1 %v3177_v1 }
 0xab0   :  { %3072 = vmatpush3.bf16.msra.mxu1 %v3602_v17  ;;  %v1416_v17 = vrot.slane %v3707_v50, %v1415_v63 }
 0xab1   :  { %3073 = vmatprep.subr.bf16.mxu1 %v3177_v1 }
 0xab4   :  { %3075 = vmatpush3.bf16.msra.mxu1 %v3606_v20 }
 0xab5   :  { %3076 = vmatprep.subr.bf16.mxu1 %v3177_v1 }
 0xab8   :  { %3078 = vmatpush3.bf16.msra.mxu1 %v3610_v24  ;;  %v1493_v24 = vsub.s32 6, %v3700_v47 }
 0xab9   :  { %3079 = vmatprep.subr.bf16.mxu1 %v3177_v1  ;;  %v943_v1 = vadd.f32 %v3674_v40, %v3697_v9 }
 0xaba   :  { %v1494_v42 = vrot.slane %v3707_v50, %v1493_v24 }
 0xabc   :  { %3081 = vmatpush3.bf16.msra.mxu1 %v3614_v27 }
 0xb72   :  { %v1407_v7 = vpop.f32.mrb[20].mxu1 }
 0xb73   :  { %v1411_v13 = vadd.f32 %v1407_v7, %v938_v4  ;;  %v2563_v29 = vpop.f32.mrb[21].mxu1 }
 0xb74   :  { %v1640_v29 = vand.u32 127, %v1023_v46 }
 0xb75   :  { %v1412_v38 = vmax.f32 %v1411_v13, 0.0 }
 0xb76   :  { %vm1648_vm9 = vcmp.eq.s32.totalorder %v1640_v29, 2  ;;  %vm1647_vm10 = vcmp.eq.s32.totalorder %v1640_v29, 1  ;;  %vm1641_vm11 = vcmp.eq.s32.totalorder %v1640_v29, 0 }
 0xb77   :  { %v1417_v20 = vmul.f32 %v1416_v17, %v1412_v38  ;;  %2597 = vmatmul.mubr.f32.vlgmr.msra.gmra.mrb[22].mxu0 %v1412_v38 }
 0xb79   :  { %v1418_v39 = vadd.f32 %v1417_v20, %v1340_v37 }
 0xc4a   :  { %v1485_v27 = vpop.f32.mrb[22].mxu0 }
 0xc4b   :  { %v1489_v41 = vadd.f32 %v1485_v27, %v943_v1  ;;  %v2598_v43 = vpop.f32.mrb[23].mxu0 }
 0xc4d   :  { %v1490_v22 = vmax.f32 %v1489_v41, 0.0 }
 0xc4f   :  { %v1495_v44 = vmul.f32 %v1494_v42, %v1490_v22  ;;  %2632 = vmatmul.mubr.f32.vlgmr.msra.gmra.mrb[22].mxu1 %v1490_v22 }
 0xc51   :  { %v1496_v45 = vadd.f32 %v1495_v44, %v1418_v39 }
 0xd22   :  { %v1563_v51 = vpop.f32.mrb[22].mxu1 }
 0xd23   :  { %v1567_v52 = vadd.f32 %v1563_v51, %v948_v49  ;;  %v2633_v53 = vpop.f32.mrb[23].mxu1 }
 0xd25   :  { %v1568_v9 = vmax.f32 %v1567_v52, 0.0 }
 0xd27   :  { %v1573_v55 = vmul.f32 %v1572_v54, %v1568_v9 }
 0xd29   :  { %v1574_v56 = vadd.f32 %v1573_v55, %v1496_v45 }
 0xd2b   :  { %1575 = vadd.xlane.f32.xlu0 %v1574_v56 }
 0xdb8   :  { %v1576_v61 = vpop.xlane.xlu0 %1575 }
 0xdb9   :  { %v1584_v62 = vadd.f32 %v1663_v58, %v1576_v61 }
 0xdbb   :  { %v1594_v40 = vand.u32 2147483647, %v1584_v62  ;;  %vm1621_vm3 = vcmp.gt.f32.partialorder %v1584_v62, 0.0  ;;  %v1592_v15 = vmul.f32 %v1585_v60, %v1584_v62  ;;  %v1591_v18 = vmax.f32 %v1584_v62, 0.0 }
 0xdbc   :  { %vm1623_vm4 = vmxor %vm1621_vm3, %vm1622_vm2 }
 0xdbd   :  { %v1595_v50 = vsub.f32 0.0, %v1594_v40  ;;  %vm1624_vm6 = vmxor %vm1623_vm4, %vm3181_vm5  ;;  %v1593_v26 = vsub.f32 %v1591_v18, %v1592_v15 }
 0xdbe   :  { %v1665_v0 = vsel %vm1624_vm6, 1.0, %v3179_v2 }
 0xdbf   :  { %v1596_v3 = vmul.f32 1.442695, %v1595_v50  ;;  %v1627_v5 = vmul.f32 %v1665_v0, %v1664_v59 }
 0xdc1   :  { %3098 = vpow2.f32 %v1596_v3  ;;  %v1628_v6 = vsel %vm1609_vm7, %v1627_v5, 0.0 }
 0xdc2   :  { %1629 = vadd.xlane.f32.xlu1 %v1628_v6 }
 0xdcb   :  { %v3099_v8 = vpop.eup %3098 }
 0xdcc   :  { %v1598_v47 = vadd.f32 1.0, %v3099_v8  ;;  %v1601_v12 = vmul.f32 -0.5, %v3099_v8  ;;  %v1604_v19 = vand.u32 2147483647, %v3099_v8 }
 0xdce   :  { %3100 = vlog2.f32 %v1598_v47  ;;  %v1602_v14 = vadd.f32 1.0, %v1601_v12  ;;  %vm1605_vm8 = vcmp.lt.f32.partialorder %v1604_v19, 0.0004427343 }
 0xdd0   :  { %v1603_v25 = vmul.f32 %v3099_v8, %v1602_v14 }
 0xdd3   :  { %1644 = vperm.xlu1 %3096, %v1584_v62  }
 0xdd8   :  { %v3101_v21 = vpop.eup %3100 }
 0xdd9   :  { %v1600_v23 = vmul.f32 0.6931472, %v3101_v21 }
 0xddb   :  { %v1606_v2 = vsel %vm1605_vm8, %v1603_v25, %v1600_v23 }
 0xddc   :  { %v1607_v28 = vadd.f32 %v1606_v2, %v1593_v26 }
 0xdde   :  { %v1608_v30 = vmul.f32 %v1664_v59, %v1607_v28 }
 0xde0   :  { %v1610_v31 = vsel %vm1609_vm7, %v1608_v30, 0.0 }
 0xde1   :  { %1611 = vadd.xlane.f32.xlu0 %v1610_v31 }
 0xe4f   :  { %v1630_v32 = vpop.xlane.xlu1 %1629 }
 0xe50   :  { %v1631_v33 = vrot.slane %v1630_v32, 4 }
 0xe52   :  { %v1632_v11 = vadd.f32 %v1631_v33, %v1630_v32 }
 0xe53   :  { %v1645_v24 = vpop.permute.xlu1 %1644 }
 0xe54   :  { %v1633_v34 = vrot.slane %v1632_v11, 2 }
 0xe56   :  { %v1634_v36 = vadd.f32 %v1633_v34, %v1632_v11 }
 0xe58   :  { %v1635_v4 = vrot.slane %v1634_v36, 1 }
 0xe5a   :  { %v1636_v17 = vadd.f32 %v1635_v4, %v1634_v36 }
 0xe6e   :  { %v1612_v10 = vpop.xlane.xlu0 %1611 }
 0xe6f   :  { %v1613_v16 = vrot.slane %v1612_v10, 4 }
 0xe71   :  { %v1614_v35 = vadd.f32 %v1613_v16, %v1612_v10 }
 0xe73   :  { %v1615_v37 = vrot.slane %v1614_v35, 2 }
 0xe75   :  { %v1616_v63 = vadd.f32 %v1615_v37, %v1614_v35 }
 0xe77   :  { %v1617_v7 = vrot.slane %v1616_v63, 1 }
 0xe79   :  { %v1618_v13 = vadd.f32 %v1617_v7, %v1616_v63 }
 0xe7b   :  { %3082 = vpush %v1618_v13 }
 0xe7c   :  { %3084 = vpush %v1636_v17 }
 0xeac   :  { %s3083_s9 = spop %3082 }
 0xead   :  { %s1620_s14 = smul.f32 0.5, %s3083_s9  ;;  %s3085_s5 = spop %3084 }
 0xeae   :  { %s1638_s26 = smul.f32 0.5, %s3085_s5 }
 0xeaf   :  { %v1651_v38 = vstv %s1620_s14 }
 0xeb0   :  { %v1649_v20 = vstv %s1638_s26 }
 0xeb1   :  { %v1650_v39 = vsel %vm1648_vm9, %v1649_v20, 0.0 }
 0xeb2   :  { %v1652_v1 = vsel %vm1647_vm10, %v1651_v38, %v1650_v39 }
 0xeb3   :  { %v1653_v27 = vsel %vm1641_vm11, %v1645_v24, %v1652_v1 }
 0xeb4   :  { %1654 = vst [vmem:[%s3829_s10] sm:$0xff] %v1653_v27 }
 0xeb5   :  { %1659 = vsyncpa [#allocation4], 1 }
 0xeb6   :  { %1660 = vsyncpa [#allocation6], 1 }

</bundles_post_ra>
